<compile_context>
chip_gen: v5e
topology: v5e:2x2
jax: 0.10.0
libtpu: 0.0.40
codegen_flags: <defaults>
</compile_context>

<pallas_src>
import functools

import jax
import jax.numpy as jnp
from jax.experimental import pallas as pl
from jax.experimental.pallas import tpu as pltpu


BATCH_TILE_QUANTUM = 256   # batch-tile granularity (sublane/MXU friendly)


def _round_up(n, m):
    return ((n + m - 1) // m) * m


def mlp_kernel(x_ref, w1_ref, b1_ref, w2_ref, b2_ref, wc_ref, bc_ref,
               emb_ref, out_ref):
    # Cast in VMEM (no-op if x is already bf16); MXU runs bf16 x bf16 -> f32.
    x = x_ref[...].astype(jnp.bfloat16)
    # hidden layer 1: Linear(784 -> 128) + ReLU
    h1 = jnp.dot(x, w1_ref[...], preferred_element_type=jnp.float32)
    h1 = jnp.maximum(h1 + b1_ref[...], 0.0)
    # hidden layer 2: Linear(128 -> 128) + ReLU  -> embeddings
    h2 = jnp.dot(h1.astype(jnp.bfloat16), w2_ref[...],
                 preferred_element_type=jnp.float32)
    h2 = jnp.maximum(h2 + b2_ref[...], 0.0)
    emb_ref[...] = h2.astype(emb_ref.dtype)          # bf16 store (half bytes)
    # classifier: Linear(128 -> 10), stored at true width (masked vst is fine:
    # store volume is tiny and the kernel is DMA-bound anyway)
    logits = jnp.dot(h2.astype(jnp.bfloat16), wc_ref[...],
                     preferred_element_type=jnp.float32)
    out_ref[...] = (logits + bc_ref[...]).astype(out_ref.dtype)


@functools.partial(jax.jit, static_argnames=("tile_b",))
def mlp_forward(x, params, tile_b=2048):
    """x: any shape flattening to (B, 784). Returns (embeddings bf16, logits f32)."""
    w1, b1, w2, b2, wc, bc = params
    x2d = x.reshape(-1, 28 * 28)                      # x.view(-1, 784); no copy
    B, K = x2d.shape
    H1 = w1.shape[1]
    H2 = w2.shape[1]
    O = wc.shape[1]

    # Batch tile: as big as requested (amortizes ~0.35us/step overhead), never
    # bigger than the (rounded) batch, and split so the grid has >= 2 steps
    # when possible (v7x megacore). No batch padding: the last block is ragged
    # and Pallas clips it (safe: all ops are row-local).
    q = BATCH_TILE_QUANTUM
    tb = min(_round_up(tile_b, q), _round_up(B, q))
    tb = min(tb, max(q, _round_up(pl.cdiv(B, 2), q)))
    grid_b = pl.cdiv(B, tb)

    const = lambda i: (0, 0)        # weights/biases: VMEM-resident across grid

    # Advisory cost estimate so XLA schedules around this HBM-bound kernel.
    cost = pl.CostEstimate(
        flops=2 * B * (K * H1 + H1 * H2 + H2 * O),
        transcendentals=0,
        bytes_accessed=(x2d.size * x2d.dtype.itemsize
                        + sum(int(p.size) * p.dtype.itemsize
                              for p in (w1, b1, w2, b2, wc, bc))
                        + B * H2 * 2      # bf16 embeddings out
                        + B * O * 4))     # f32 logits out

    emb, out = pl.pallas_call(
        mlp_kernel,
        out_shape=(
            jax.ShapeDtypeStruct((B, H2), jnp.bfloat16),
            jax.ShapeDtypeStruct((B, O), jnp.float32),
        ),
        grid=(grid_b,),
        in_specs=[
            pl.BlockSpec((tb, K), lambda i: (i, 0)),          # x tile (K=784, full dim)
            pl.BlockSpec((K, H1), const),                     # w1 (bf16)
            pl.BlockSpec((1, H1), const),                     # b1 (f32)
            pl.BlockSpec((H1, H2), const),                    # w2 (bf16)
            pl.BlockSpec((1, H2), const),                     # b2 (f32)
            pl.BlockSpec((H2, O), const),                     # wc (bf16, true width)
            pl.BlockSpec((1, O), const),                      # bc (f32, true width)
        ],
        out_specs=(
            pl.BlockSpec((tb, H2), lambda i: (i, 0)),         # embeddings (bf16)
            pl.BlockSpec((tb, O), lambda i: (i, 0)),          # logits (true width)
        ),
        compiler_params=pltpu.CompilerParams(
            dimension_semantics=("parallel",),
            vmem_limit_bytes=48 << 20),
        cost_estimate=cost,
    )(x2d, w1, b1, w2, b2, wc, bc)

    return emb, out


def init_params(key, input_size=28 * 28, hidden=(128, 128), output_size=10):
    """f32 init mirroring nn.Linear's U(-1/sqrt(in), 1/sqrt(in)).

    Weights are stored transposed vs PyTorch, i.e. (in, out), so each layer
    is y = x @ W + b on the MXU.
    """
    sizes = [(input_size, hidden[0]), (hidden[0], hidden[1]),
             (hidden[1], output_size)]
    params = []
    for (fan_in, fan_out) in sizes:
        key, kw, kb = jax.random.split(key, 3)
        bound = 1.0 / (fan_in ** 0.5)
        w = jax.random.uniform(kw, (fan_in, fan_out), jnp.float32,
                               minval=-bound, maxval=bound)
        b = jax.random.uniform(kb, (1, fan_out), jnp.float32,
                               minval=-bound, maxval=bound)
        params += [w, b]
    return tuple(params)


def prepare_params(params):
    """One-time cast for the kernel: weights -> bf16, biases -> f32 (1, out).

    Done once outside the forward so the hot path carries no per-call
    pad/cast passes over the parameters.
    """
    w1, b1, w2, b2, wc, bc = params
    return (w1.astype(jnp.bfloat16), b1.astype(jnp.float32),
            w2.astype(jnp.bfloat16), b2.astype(jnp.float32),
            wc.astype(jnp.bfloat16), bc.astype(jnp.float32))


if __name__ == "__main__":
    key = jax.random.PRNGKey(0)
    kx, kp = jax.random.split(key)

    # Small batch of "MNIST-like" images: (B, 1, 28, 28) NCHW.
    x = jax.random.normal(kx, (8, 1, 28, 28), jnp.float32)
    params_f32 = init_params(kp)

    # One-time producer-side casts (not part of the per-call hot path).
    params_dev = prepare_params(params_f32)
    x_bf = x.astype(jnp.bfloat16)

    emb, out = mlp_forward(x_bf, params_dev)
    jax.block_until_ready((emb, out))

    # Reference in f32 JAX from the same (bf16-rounded) inputs/weights.
    # Loose tolerance: kernel uses bf16 MXU operands, bf16 h1->h2 recast and
    # bf16 embedding storage, with f32 accumulation.
    w1, b1, w2, b2, wc, bc = [p.astype(jnp.float32) for p in params_dev]
    x2d = x_bf.astype(jnp.float32).reshape(-1, 28 * 28)
    h1 = jnp.maximum(x2d @ w1 + b1, 0.0)
    h2 = jnp.maximum(h1 @ w2 + b2, 0.0)
    ref_out = h2 @ wc + bc

    assert emb.shape == (8, 128) and emb.dtype == jnp.bfloat16
    assert out.shape == (8, 10) and out.dtype == jnp.float32
    assert jnp.allclose(emb.astype(jnp.float32), h2, atol=3e-2, rtol=3e-2), \
        float(jnp.max(jnp.abs(emb.astype(jnp.float32) - h2)))
    assert jnp.allclose(out, ref_out, atol=3e-2, rtol=3e-2), \
        float(jnp.max(jnp.abs(out - ref_out)))

    print("KERNEL_OK")
</pallas_src>

<mosaic_0001>
module attributes {stable_mosaic.version = 11 : i64} {
  func.func @mlp_kernel(%arg0: i32, %arg1: memref<256x784xbf16, #tpu.memory_space<vmem>>, %arg2: memref<784x128xbf16, #tpu.memory_space<vmem>>, %arg3: memref<1x128xf32, #tpu.memory_space<vmem>>, %arg4: memref<128x128xbf16, #tpu.memory_space<vmem>>, %arg5: memref<1x128xf32, #tpu.memory_space<vmem>>, %arg6: memref<128x10xbf16, #tpu.memory_space<vmem>>, %arg7: memref<1x10xf32, #tpu.memory_space<vmem>>, %arg8: memref<256x128xbf16, #tpu.memory_space<vmem>>, %arg9: memref<256x10xf32, #tpu.memory_space<vmem>>) attributes {dimension_semantics = [#tpu.dimension_semantics<parallel>], iteration_bounds = array<i64: 1>, scalar_prefetch = 0 : i64, scratch_operands = 0 : i64, tpu.core_type = #tpu.core_type<tc>, window_params = [{transform_indices = @transform_0, window_bounds = array<i64: 256, 784>}, {pipeline_mode = #tpu.pipeline_mode<synchronous>, transform_indices = @transform_1, window_bounds = array<i64: 784, 128>}, {pipeline_mode = #tpu.pipeline_mode<synchronous>, transform_indices = @transform_2, window_bounds = array<i64: 1, 128>}, {pipeline_mode = #tpu.pipeline_mode<synchronous>, transform_indices = @transform_3, window_bounds = array<i64: 128, 128>}, {pipeline_mode = #tpu.pipeline_mode<synchronous>, transform_indices = @transform_4, window_bounds = array<i64: 1, 128>}, {pipeline_mode = #tpu.pipeline_mode<synchronous>, transform_indices = @transform_5, window_bounds = array<i64: 128, 10>}, {pipeline_mode = #tpu.pipeline_mode<synchronous>, transform_indices = @transform_6, window_bounds = array<i64: 1, 10>}, {transform_indices = @transform_7, window_bounds = array<i64: 256, 128>}, {transform_indices = @transform_8, window_bounds = array<i64: 256, 10>}]} {
    %c0 = arith.constant 0 : index
    %c0_0 = arith.constant 0 : index
    %0 = vector.load %arg1[%c0, %c0_0] : memref<256x784xbf16, #tpu.memory_space<vmem>>, vector<256x784xbf16>
    %c0_1 = arith.constant 0 : index
    %c0_2 = arith.constant 0 : index
    %1 = vector.load %arg2[%c0_1, %c0_2] : memref<784x128xbf16, #tpu.memory_space<vmem>>, vector<784x128xbf16>
    %cst = arith.constant dense<0.000000e+00> : vector<256x128xf32>
    %2 = tpu.matmul %0, %1, %cst {dimension_numbers = #tpu.dot_dimension_numbers<[1], [0], [0], [1], [0, 0, 1, 1], [], []>} : vector<256x784xbf16>, vector<784x128xbf16>, vector<256x128xf32> -> vector<256x128xf32>
    %c0_3 = arith.constant 0 : index
    %c0_4 = arith.constant 0 : index
    %3 = vector.load %arg3[%c0_3, %c0_4] : memref<1x128xf32, #tpu.memory_space<vmem>>, vector<1x128xf32>
    %4 = vector.broadcast %3 : vector<1x128xf32> to vector<256x128xf32>
    %5 = arith.addf %2, %4 : vector<256x128xf32>
    %cst_5 = arith.constant 0.000000e+00 : f32
    %6 = vector.broadcast %cst_5 : f32 to vector<256x128xf32>
    %7 = arith.maximumf %5, %6 : vector<256x128xf32>
    %8 = arith.truncf %7 : vector<256x128xf32> to vector<256x128xbf16>
    %c0_6 = arith.constant 0 : index
    %c0_7 = arith.constant 0 : index
    %9 = vector.load %arg4[%c0_6, %c0_7] : memref<128x128xbf16, #tpu.memory_space<vmem>>, vector<128x128xbf16>
    %cst_8 = arith.constant dense<0.000000e+00> : vector<256x128xf32>
    %10 = tpu.matmul %8, %9, %cst_8 {dimension_numbers = #tpu.dot_dimension_numbers<[1], [0], [0], [1], [0, 0, 1, 1], [], []>} : vector<256x128xbf16>, vector<128x128xbf16>, vector<256x128xf32> -> vector<256x128xf32>
    %c0_9 = arith.constant 0 : index
    %c0_10 = arith.constant 0 : index
    %11 = vector.load %arg5[%c0_9, %c0_10] : memref<1x128xf32, #tpu.memory_space<vmem>>, vector<1x128xf32>
    %12 = vector.broadcast %11 : vector<1x128xf32> to vector<256x128xf32>
    %13 = arith.addf %10, %12 : vector<256x128xf32>
    %cst_11 = arith.constant 0.000000e+00 : f32
    %14 = vector.broadcast %cst_11 : f32 to vector<256x128xf32>
    %15 = arith.maximumf %13, %14 : vector<256x128xf32>
    %16 = arith.truncf %15 : vector<256x128xf32> to vector<256x128xbf16>
    %c0_12 = arith.constant 0 : index
    %c0_13 = arith.constant 0 : index
    %17 = vector.load %arg8[%c0_12, %c0_13] : memref<256x128xbf16, #tpu.memory_space<vmem>>, vector<256x128xbf16>
    tpu.vector_store %arg8[%c0_12, %c0_13], %16 {strides = array<i32>} : memref<256x128xbf16, #tpu.memory_space<vmem>>, vector<256x128xbf16>,
    %18 = arith.truncf %15 : vector<256x128xf32> to vector<256x128xbf16>
    %c0_14 = arith.constant 0 : index
    %c0_15 = arith.constant 0 : index
    %19 = vector.load %arg6[%c0_14, %c0_15] : memref<128x10xbf16, #tpu.memory_space<vmem>>, vector<128x10xbf16>
    %cst_16 = arith.constant dense<0.000000e+00> : vector<256x10xf32>
    %20 = tpu.matmul %18, %19, %cst_16 {dimension_numbers = #tpu.dot_dimension_numbers<[1], [0], [0], [1], [0, 0, 1, 1], [], []>} : vector<256x128xbf16>, vector<128x10xbf16>, vector<256x10xf32> -> vector<256x10xf32>
    %c0_17 = arith.constant 0 : index
    %c0_18 = arith.constant 0 : index
    %21 = vector.load %arg7[%c0_17, %c0_18] : memref<1x10xf32, #tpu.memory_space<vmem>>, vector<1x10xf32>
    %22 = vector.broadcast %21 : vector<1x10xf32> to vector<256x10xf32>
    %23 = arith.addf %20, %22 : vector<256x10xf32>
    %c0_19 = arith.constant 0 : index
    %c0_20 = arith.constant 0 : index
    %24 = vector.load %arg9[%c0_19, %c0_20] : memref<256x10xf32, #tpu.memory_space<vmem>>, vector<256x10xf32>
    tpu.vector_store %arg9[%c0_19, %c0_20], %23 {strides = array<i32>} : memref<256x10xf32, #tpu.memory_space<vmem>>, vector<256x10xf32>,
    return
  }
  func.func @transform_0(%arg0: i32) -> (i32, i32) {
    %c0_i32 = arith.constant 0 : i32
    %c0_i32_0 = arith.constant 0 : i32
    return %arg0, %c0_i32 : i32, i32
  }
  func.func @transform_1(%arg0: i32) -> (i32, i32) {
    %c0_i32 = arith.constant 0 : i32
    %c0_i32_0 = arith.constant 0 : i32
    %c0_i32_1 = arith.constant 0 : i32
    return %c0_i32, %c0_i32_0 : i32, i32
  }
  func.func @transform_2(%arg0: i32) -> (i32, i32) {
    %c0_i32 = arith.constant 0 : i32
    %c0_i32_0 = arith.constant 0 : i32
    %c0_i32_1 = arith.constant 0 : i32
    return %c0_i32, %c0_i32_0 : i32, i32
  }
  func.func @transform_3(%arg0: i32) -> (i32, i32) {
    %c0_i32 = arith.constant 0 : i32
    %c0_i32_0 = arith.constant 0 : i32
    %c0_i32_1 = arith.constant 0 : i32
    return %c0_i32, %c0_i32_0 : i32, i32
  }
  func.func @transform_4(%arg0: i32) -> (i32, i32) {
    %c0_i32 = arith.constant 0 : i32
    %c0_i32_0 = arith.constant 0 : i32
    %c0_i32_1 = arith.constant 0 : i32
    return %c0_i32, %c0_i32_0 : i32, i32
  }
  func.func @transform_5(%arg0: i32) -> (i32, i32) {
    %c0_i32 = arith.constant 0 : i32
    %c0_i32_0 = arith.constant 0 : i32
    %c0_i32_1 = arith.constant 0 : i32
    return %c0_i32, %c0_i32_0 : i32, i32
  }
  func.func @transform_6(%arg0: i32) -> (i32, i32) {
    %c0_i32 = arith.constant 0 : i32
    %c0_i32_0 = arith.constant 0 : i32
    %c0_i32_1 = arith.constant 0 : i32
    return %c0_i32, %c0_i32_0 : i32, i32
  }
  func.func @transform_7(%arg0: i32) -> (i32, i32) {
    %c0_i32 = arith.constant 0 : i32
    %c0_i32_0 = arith.constant 0 : i32
    return %arg0, %c0_i32 : i32, i32
  }
  func.func @transform_8(%arg0: i32) -> (i32, i32) {
    %c0_i32 = arith.constant 0 : i32
    %c0_i32_0 = arith.constant 0 : i32
    return %arg0, %c0_i32 : i32, i32
  }
}

</mosaic_0001>

<bundles_post_ra>
// kernel: mlp_forward.1
= control target key start
LH: loop header
LB: loop body
LE: loop exit
PB: predicated region body
PF: predicated region fallthrough
CT: control target
= control target key end

     0   :  { %14 = vsyncpa [#allocation3], 0  ;;  %s4820_s0 = inlined_call_operand.vmem [shape: bf16[8,784], index: 0, kind: input, shape index: {}]   ;;  %s4821_s1 = inlined_call_operand.vmem [shape: bf16[784,128], index: 1, kind: input, shape index: {}]   ;;  %s4822_s2 = inlined_call_operand.vmem [shape: f32[1,128], index: 2, kind: input, shape index: {}]   ;;  %s4823_s3 = inlined_call_operand.vmem [shape: bf16[128,128], index: 3, kind: input, shape index: {}]   ;;  %s4824_s4 = inlined_call_operand.vmem [shape: f32[1,128], index: 4, kind: input, shape index: {}]   ;;  %s4825_s5 = inlined_call_operand.vmem [shape: bf16[128,10], index: 5, kind: input, shape index: {}]   ;;  %s4826_s6 = inlined_call_operand.vmem [shape: f32[1,10], index: 6, kind: input, shape index: {}]   ;;  %s4827_s7 = inlined_call_operand.hbm [shape: bf16[8,128], index: 7, kind: output, shape index: {0}]   ;;  %s4828_s8 = inlined_call_operand.hbm [shape: f32[8,10], index: 8, kind: output, shape index: {1}]  }
   0x1   :  { %v3253_v0 = vld [vmem:[%s4821_s1 + $0x38] sm:$0xff] }
   0x2   :  { %15 = vsyncpa [#allocation5], 0  ;;  %3406 = vmatpush.bf16.msra.mxu1 %v3253_v0  ;;  %3407 = vmatpush.bf16.msra.mxu2 %v3253_v0  ;;  %v3252_v1 = vld [vmem:[%s4821_s1 + $0x30] sm:$0xff]  ;;  %v3251_v2 = vld [vmem:[%s4821_s1 + $0x28] sm:$0xff]  ;;  %vm1115_vm0 = vcmask 130048   ;;  %vm2341_vm1 = vcmask 80896  }
   0x3   :  { %3408 = vmatpush.bf16.msra.mxu3 %v3253_v0  ;;  %1164 = vmatpush.bf16.msra.mxu0 %v3253_v0  ;;  %v3250_v3 = vld [vmem:[%s4821_s1 + $0x20] sm:$0xff]  ;;  %v3249_v4 = vld [vmem:[%s4821_s1 + $0x18] sm:$0xff]  ;;  %v3248_v5 = vld [vmem:[%s4821_s1 + $0x10] sm:$0xff] }
   0x4   :  { %v3247_v6 = vld [vmem:[%s4821_s1 + $0x8] sm:$0xff]  ;;  %v3246_v7 = vld [vmem:[%s4821_s1] sm:$0xff]  ;;  %v3165_v9 = vld [vmem:[%s4820_s0 + $0xf8] sm:$0xf0] }
   0x5   :  { %v2524_v8 = vld [vmem:[%s4820_s0 + $0xe0] sm:$0xf]  ;;  %v3193_v11 = vld [vmem:[%s4820_s0 + $0x1d8] sm:$0xf0]  ;;  %v3268_v21 = vld [vmem:[%s4821_s1 + $0xb0] sm:$0xff] }
   0x6   :  { %3409 = vmatpush.bf16.msra.mxu1 %v3252_v1  ;;  %3410 = vmatpush.bf16.msra.mxu2 %v3252_v1  ;;  %v2636_v10 = vld [vmem:[%s4820_s0 + $0x1c0] sm:$0xf]  ;;  %v3269_v12 = vld [vmem:[%s4821_s1 + $0xb8] sm:$0xff]  ;;  %v2525_v18 = vor.u32 %v3165_v9, %v2524_v8  ;;  %v3260_v23 = vld [vmem:[%s4821_s1 + $0x70] sm:$0xff] }
   0x7   :  { %3411 = vmatpush.bf16.msra.mxu3 %v3252_v1  ;;  %1165 = vmatpush.bf16.msra.mxu0 %v3252_v1  ;;  %v2748_v13 = vld [vmem:[%s4820_s0 + $0x2a0] sm:$0xf]  ;;  %v3221_v14 = vld [vmem:[%s4820_s0 + $0x2b8] sm:$0xf0]  ;;  %v2637_v19 = vor.u32 %v3193_v11, %v2636_v10  ;;  %v3267_v25 = vld [vmem:[%s4821_s1 + $0xa8] sm:$0xff] }
   0x8   :  { %v3261_v15 = vld [vmem:[%s4821_s1 + $0x78] sm:$0xff]  ;;  %v2412_v16 = vld [vmem:[%s4820_s0] sm:$0xf]  ;;  %v2749_v20 = vor.u32 %v3221_v14, %v2748_v13  ;;  %v3259_v26 = vld [vmem:[%s4821_s1 + $0x68] sm:$0xff] }
   0x9   :  { %v3137_v17 = vld [vmem:[%s4820_s0 + $0x18] sm:$0xf0]  ;;  %v3276_v27 = vld [vmem:[%s4821_s1 + $0xf0] sm:$0xff]  ;;  %v3266_v30 = vld [vmem:[%s4821_s1 + $0xa0] sm:$0xff] }
   0xa   :  { %3412 = vmatpush.bf16.msra.mxu1 %v3251_v2  ;;  %3413 = vmatpush.bf16.msra.mxu2 %v3251_v2  ;;  %v2413_v22 = vor.u32 %v3137_v17, %v2412_v16  ;;  %v3277_v24 = vld [vmem:[%s4821_s1 + $0xf8] sm:$0xff]  ;;  %v3284_v29 = vld [vmem:[%s4821_s1 + $0x130] sm:$0xff]  ;;  %v3258_v31 = vld [vmem:[%s4821_s1 + $0x60] sm:$0xff] }
   0xb   :  { %3414 = vmatpush.bf16.msra.mxu3 %v3251_v2  ;;  %1166 = vmatpush.bf16.msra.mxu0 %v3251_v2  ;;  %v3285_v28 = vld [vmem:[%s4821_s1 + $0x138] sm:$0xff]  ;;  %v3275_v32 = vld [vmem:[%s4821_s1 + $0xe8] sm:$0xff]  ;;  %v3172_v34 = vld [vmem:[%s4820_s0 + $0x130] sm:$0xf0] }
   0xc   :  { %v2552_v33 = vld [vmem:[%s4820_s0 + $0x118] sm:$0xf]  ;;  %v3200_v36 = vld [vmem:[%s4820_s0 + $0x210] sm:$0xf0]  ;;  %v3274_v43 = vld [vmem:[%s4821_s1 + $0xe0] sm:$0xff] }
   0xd   :  { %v2664_v35 = vld [vmem:[%s4820_s0 + $0x1f8] sm:$0xf]  ;;  %v3228_v38 = vld [vmem:[%s4820_s0 + $0x2f0] sm:$0xf0]  ;;  %v2553_v44 = vor.u32 %v3172_v34, %v2552_v33  ;;  %v3283_v51 = vld [vmem:[%s4821_s1 + $0x128] sm:$0xff] }
   0xe   :  { %3415 = vmatpush.bf16.msra.mxu1 %v3250_v3  ;;  %3416 = vmatpush.bf16.msra.mxu2 %v3250_v3  ;;  %v2776_v37 = vld [vmem:[%s4820_s0 + $0x2d8] sm:$0xf]  ;;  %v3144_v41 = vld [vmem:[%s4820_s0 + $0x50] sm:$0xf0]  ;;  %v2665_v45 = vor.u32 %v3200_v36, %v2664_v35  ;;  %v3263_v52 = vld [vmem:[%s4821_s1 + $0x88] sm:$0xff] }
   0xf   :  { %3417 = vmatpush.bf16.msra.mxu3 %v3250_v3  ;;  %1167 = vmatpush.bf16.msra.mxu0 %v3250_v3  ;;  %v2440_v39 = vld [vmem:[%s4820_s0 + $0x38] sm:$0xf]  ;;  %v2777_v46 = vor.u32 %v3228_v38, %v2776_v37  ;;  %v3264_v48 = vld [vmem:[%s4821_s1 + $0x90] sm:$0xff]  ;;  %v3255_v53 = vld [vmem:[%s4821_s1 + $0x48] sm:$0xff] }
  0x10   :  { %v3265_v40 = vld [vmem:[%s4821_s1 + $0x98] sm:$0xff]  ;;  %v2441_v47 = vor.u32 %v3144_v41, %v2440_v39  ;;  %v3256_v49 = vld [vmem:[%s4821_s1 + $0x50] sm:$0xff]  ;;  %v3282_v55 = vld [vmem:[%s4821_s1 + $0x120] sm:$0xff] }
  0x11   :  { %v3257_v42 = vld [vmem:[%s4821_s1 + $0x58] sm:$0xff]  ;;  %v3272_v54 = vld [vmem:[%s4821_s1 + $0xd0] sm:$0xff]  ;;  %v3262_v56 = vld [vmem:[%s4821_s1 + $0x80] sm:$0xff] }
  0x12   :  { %3418 = vmatpush.bf16.msra.mxu1 %v3249_v4  ;;  %3419 = vmatpush.bf16.msra.mxu2 %v3249_v4  ;;  %v3273_v50 = vld [vmem:[%s4821_s1 + $0xd8] sm:$0xff]  ;;  %v3271_v57 = vld [vmem:[%s4821_s1 + $0xc8] sm:$0xff]  ;;  %v3254_v58 = vld [vmem:[%s4821_s1 + $0x40] sm:$0xff] }
  0x13   :  { %3420 = vmatpush.bf16.msra.mxu3 %v3249_v4  ;;  %1168 = vmatpush.bf16.msra.mxu0 %v3249_v4  ;;  %v2580_v59 = vld [vmem:[%s4820_s0 + $0x150] sm:$0xf]  ;;  %v3281_v60 = vld [vmem:[%s4821_s1 + $0x118] sm:$0xff]  ;;  %v3179_v61 = vld [vmem:[%s4820_s0 + $0x168] sm:$0xf0] }
  0x14   :  { %v2692_v62 = vld [vmem:[%s4820_s0 + $0x230] sm:$0xf]  ;;  %v3207_v63 = vld [vmem:[%s4820_s0 + $0x248] sm:$0xf0]  ;;  %v3270_v4 = vld [vmem:[%s4821_s1 + $0xc0] sm:$0xff] }
  0x15   :  { %v2804_v0 = vld [vmem:[%s4820_s0 + $0x310] sm:$0xf]  ;;  %v3235_v1 = vld [vmem:[%s4820_s0 + $0x328] sm:$0xf0]  ;;  %v3294_v10 = vld [vmem:[%s4821_s1 + $0x180] sm:$0xff] }
  0x16   :  { %3421 = vmatpush.bf16.msra.mxu1 %v3248_v5  ;;  %3422 = vmatpush.bf16.msra.mxu2 %v3248_v5  ;;  %v2468_v2 = vld [vmem:[%s4820_s0 + $0x70] sm:$0xf]  ;;  %v3151_v3 = vld [vmem:[%s4820_s0 + $0x88] sm:$0xf0]  ;;  %v3278_v13 = vld [vmem:[%s4821_s1 + $0x100] sm:$0xff] }
  0x17   :  { %3423 = vmatpush.bf16.msra.mxu3 %v3248_v5  ;;  %1169 = vmatpush.bf16.msra.mxu0 %v3248_v5  ;;  %v2581_v5 = vor.u32 %v3179_v61, %v2580_v59  ;;  %v3280_v8 = vld [vmem:[%s4821_s1 + $0x110] sm:$0xff]  ;;  %v2469_v9 = vor.u32 %v3151_v3, %v2468_v2  ;;  %v3279_v11 = vld [vmem:[%s4821_s1 + $0x108] sm:$0xff]  ;;  %v3214_v17 = vld [vmem:[%s4820_s0 + $0x280] sm:$0xf0] }
  0x18   :  { %v2608_v14 = vld [vmem:[%s4820_s0 + $0x188] sm:$0xf]  ;;  %v3139_v33 = vld [vmem:[%s4820_s0 + $0x28] sm:$0xf0]  ;;  %v3292_v38 = vld [vmem:[%s4821_s1 + $0x170] sm:$0xff] }
  0x19   :  { %v2720_v16 = vld [vmem:[%s4820_s0 + $0x268] sm:$0xf]  ;;  %v3141_v39 = vld [vmem:[%s4820_s0 + $0x3c] sm:$0xf]  ;;  %v2448_v41 = vld [vmem:[%s4820_s0 + $0x40] sm:$0xf] }
  0x1a   :  { %3424 = vmatpush.bf16.msra.mxu1 %v3247_v6  ;;  %3425 = vmatpush.bf16.msra.mxu2 %v3247_v6  ;;  %v2504_v2 = vld [vmem:[%s4820_s0 + $0xb0] sm:$0xf]  ;;  %v3159_v3 = vld [vmem:[%s4820_s0 + $0xc8] sm:$0xf0] }
  0x1b   :  { %3426 = vmatpush.bf16.msra.mxu3 %v3247_v6  ;;  %1170 = vmatpush.bf16.msra.mxu0 %v3247_v6  ;;  %v2693_v6 = vor.u32 %v3207_v63, %v2692_v62  ;;  %v3291_v63 = vld [vmem:[%s4821_s1 + $0x168] sm:$0xff] }
  0x1e   :  { %3427 = vmatpush.bf16.msra.mxu1 %v3246_v7  ;;  %3428 = vmatpush.bf16.msra.mxu2 %v3246_v7 }
  0x1f   :  { %3429 = vmatpush.bf16.msra.mxu3 %v3246_v7  ;;  %1171 = vmatpush.bf16.msra.mxu0 %v3246_v7  ;;  %v2805_v7 = vor.u32 %v3235_v1, %v2804_v0  ;;  %v3155_v0 = vld [vmem:[%s4820_s0 + $0xac] sm:$0xf]  ;;  %v2498_v1 = vld [vmem:[%s4820_s0 + $0xc4] sm:$0xf0] }
  0x21   :  { %1192 = vmatmul.bf16.vlgmr.msra.gmra.mxu1 %v2525_v18  ;;  %1212 = vmatmul.bf16.vlgmr.msra.gmra.mxu2 %v2637_v19  ;;  %v2832_v18 = vld [vmem:[%s4820_s0 + $0x348] sm:$0xf]  ;;  %v3242_v19 = vld [vmem:[%s4820_s0 + $0x360] sm:$0xf0] }
  0x22   :  { %1342 = vmatpush.bf16.msrb.mxu2 %v3269_v12  ;;  %1253 = vmatpush.bf16.msrb.mxu1 %v3261_v15  ;;  %v3293_v12 = vld [vmem:[%s4821_s1 + $0x178] sm:$0xff]  ;;  %v3186_v15 = vld [vmem:[%s4820_s0 + $0x1a0] sm:$0xf0] }
  0x23   :  { %1232 = vmatmul.bf16.vlgmr.msra.gmra.mxu3 %v2749_v20  ;;  %1172 = vmatmul.bf16.vlgmr.msra.gmra.mxu0 %v2413_v22  ;;  %v2496_v20 = vld [vmem:[%s4820_s0 + $0xa8] sm:$0xf]  ;;  %v2609_v22 = vor.u32 %v3186_v15, %v2608_v14  ;;  %v3166_v15 = vld [vmem:[%s4820_s0 + $0x100] sm:$0xf0] }
  0x24   :  { %1431 = vmatpush.bf16.msrb.mxu3 %v3277_v24  ;;  %1520 = vmatpush.bf16.msrb.mxu0 %v3285_v28  ;;  %v2833_v24 = vor.u32 %v3242_v19, %v2832_v18  ;;  %v2420_v28 = vld [vmem:[%s4820_s0 + $0x8] sm:$0xf]  ;;  %v2540_v19 = vld [vmem:[%s4820_s0 + $0xf0] sm:$0xf] }
  0x25   :  { %v2532_v14 = vld [vmem:[%s4820_s0 + $0xe8] sm:$0xf] }
  0x26   :  { %1343 = vmatpush.bf16.msrb.mxu2 %v3268_v21  ;;  %1254 = vmatpush.bf16.msrb.mxu1 %v3260_v23  ;;  %v3158_v21 = vld [vmem:[%s4820_s0 + $0xc0] sm:$0xf0]  ;;  %v2721_v23 = vor.u32 %v3214_v17, %v2720_v16  ;;  %v3881_v16 = vld [vmem:[%s4822_s2] ss:$0 sm:$0xff]  ;;  %v3163_v17 = vld [vmem:[%s4820_s0 + $0xec] sm:$0xf] }
  0x27   :  { %v2534_v18 = vld [vmem:[%s4820_s0 + $0x104] sm:$0xf0] }
  0x28   :  { %1432 = vmatpush.bf16.msrb.mxu3 %v3276_v27  ;;  %1521 = vmatpush.bf16.msrb.mxu0 %v3284_v29  ;;  %v2414_v27 = vld [vmem:[%s4820_s0 + $0x1c] sm:$0xf0]  ;;  %v3138_v29 = vld [vmem:[%s4820_s0 + $0x20] sm:$0xf0] }
  0x29   :  { %v2421_v35 = vor.u32 %v3138_v29, %v2420_v28 }
  0x2a   :  { %1344 = vmatpush.bf16.msrb.mxu2 %v3267_v25  ;;  %1255 = vmatpush.bf16.msrb.mxu1 %v3259_v26  ;;  %v2497_v25 = vor.u32 %v3158_v21, %v2496_v20  ;;  %v3134_v26 = vld [vmem:[%s4820_s0 + $0x4] sm:$0xf]  ;;  %v3167_v20 = vld [vmem:[%s4820_s0 + $0x108] sm:$0xf0] }
  0x2b   :  { %v2417_v34 = vor.u32 %v3134_v26, %v2414_v27  ;;  %v2541_v26 = vor.u32 %v3167_v20, %v2540_v19 }
  0x2c   :  { %1433 = vmatpush.bf16.msrb.mxu3 %v3275_v32  ;;  %1522 = vmatpush.bf16.msrb.mxu0 %v3283_v51  ;;  %v2428_v32 = vld [vmem:[%s4820_s0 + $0x10] sm:$0xf]  ;;  %v3148_v51 = vld [vmem:[%s4820_s0 + $0x74] sm:$0xf] }
  0x2d   :  { %v2429_v37 = vor.u32 %v3139_v33, %v2428_v32 }
  0x2e   :  { %1345 = vmatpush.bf16.msrb.mxu2 %v3266_v30  ;;  %1256 = vmatpush.bf16.msrb.mxu1 %v3258_v31  ;;  %v3135_v30 = vld [vmem:[%s4820_s0 + $0xc] sm:$0xf]  ;;  %v2422_v31 = vld [vmem:[%s4820_s0 + $0x24] sm:$0xf0] }
  0x2f   :  { %v2425_v36 = vor.u32 %v3135_v30, %v2422_v31  ;;  %v3290_v31 = vld [vmem:[%s4821_s1 + $0x160] sm:$0xff] }
  0x30   :  { %1434 = vmatpush.bf16.msrb.mxu3 %v3274_v43  ;;  %1523 = vmatpush.bf16.msrb.mxu0 %v3282_v55  ;;  %v3142_v43 = vld [vmem:[%s4820_s0 + $0x44] sm:$0xf]  ;;  %v3149_v55 = vld [vmem:[%s4820_s0 + $0x7c] sm:$0xf] }
  0x31   :  { %1197 = vmatmul.bf16.gmra.mxu1 %v2553_v44  ;;  %1217 = vmatmul.bf16.gmra.mxu2 %v2665_v45  ;;  %v2450_v44 = vld [vmem:[%s4820_s0 + $0x5c] sm:$0xf0]  ;;  %v2456_v45 = vld [vmem:[%s4820_s0 + $0x48] sm:$0xf] }
  0x32   :  { %1346 = vmatpush.bf16.msrb.mxu2 %v3265_v40  ;;  %1257 = vmatpush.bf16.msrb.mxu1 %v3257_v42  ;;  %v2442_v40 = vld [vmem:[%s4820_s0 + $0x54] sm:$0xf0]  ;;  %v3145_v42 = vld [vmem:[%s4820_s0 + $0x58] sm:$0xf0] }
  0x33   :  { %1237 = vmatmul.bf16.gmra.mxu3 %v2777_v46  ;;  %1177 = vmatmul.bf16.gmra.mxu0 %v2441_v47  ;;  %v3146_v46 = vld [vmem:[%s4820_s0 + $0x60] sm:$0xf0]  ;;  %v2445_v47 = vor.u32 %v3141_v39, %v2442_v40  ;;  %v3173_v39 = vld [vmem:[%s4820_s0 + $0x138] sm:$0xf0] }
  0x34   :  { %1435 = vmatpush.bf16.msrb.mxu3 %v3273_v50  ;;  %1524 = vmatpush.bf16.msrb.mxu0 %v3281_v60  ;;  %v2457_v50 = vor.u32 %v3146_v46, %v2456_v45  ;;  %v3170_v40 = vld [vmem:[%s4820_s0 + $0x124] sm:$0xf] }
  0x36   :  { %1347 = vmatpush.bf16.msrb.mxu2 %v3264_v48  ;;  %1258 = vmatpush.bf16.msrb.mxu1 %v3256_v49  ;;  %v2449_v48 = vor.u32 %v3145_v42, %v2448_v41  ;;  %v2453_v49 = vor.u32 %v3142_v43, %v2450_v44  ;;  %v2562_v41 = vld [vmem:[%s4820_s0 + $0x13c] sm:$0xf0]  ;;  %v2568_v43 = vld [vmem:[%s4820_s0 + $0x128] sm:$0xf]  ;;  %v3174_v44 = vld [vmem:[%s4820_s0 + $0x140] sm:$0xf0] }
  0x38   :  { %1436 = vmatpush.bf16.msrb.mxu3 %v3272_v54  ;;  %1525 = vmatpush.bf16.msrb.mxu0 %v3280_v8  ;;  %v3152_v54 = vld [vmem:[%s4820_s0 + $0x90] sm:$0xf0]  ;;  %v2501_v8 = vor.u32 %v3155_v0, %v2498_v1  ;;  %v2588_v0 = vld [vmem:[%s4820_s0 + $0x158] sm:$0xf] }
  0x39   :  { %v3180_v1 = vld [vmem:[%s4820_s0 + $0x170] sm:$0xf0] }
  0x3a   :  { %1348 = vmatpush.bf16.msrb.mxu2 %v3263_v52  ;;  %1259 = vmatpush.bf16.msrb.mxu1 %v3255_v53  ;;  %v2470_v52 = vld [vmem:[%s4820_s0 + $0x8c] sm:$0xf0]  ;;  %v2476_v53 = vld [vmem:[%s4820_s0 + $0x78] sm:$0xf] }
  0x3b   :  { %v2473_v59 = vor.u32 %v3148_v51, %v2470_v52  ;;  %v2477_v60 = vor.u32 %v3152_v54, %v2476_v53  ;;  %v2565_v51 = vor.u32 %v3170_v40, %v2562_v41  ;;  %v2569_v53 = vor.u32 %v3174_v44, %v2568_v43  ;;  %v3188_v40 = vld [vmem:[%s4820_s0 + $0x1b0] sm:$0xf0] }
  0x3c   :  { %1437 = vmatpush.bf16.msrb.mxu3 %v3271_v57  ;;  %1526 = vmatpush.bf16.msrb.mxu0 %v3279_v11  ;;  %v2484_v57 = vld [vmem:[%s4820_s0 + $0x80] sm:$0xf] }
  0x3e   :  { %1349 = vmatpush.bf16.msrb.mxu2 %v3262_v56  ;;  %1260 = vmatpush.bf16.msrb.mxu1 %v3254_v58  ;;  %v2478_v56 = vld [vmem:[%s4820_s0 + $0x94] sm:$0xf0]  ;;  %v3153_v58 = vld [vmem:[%s4820_s0 + $0x98] sm:$0xf0] }
  0x3f   :  { %v2481_v61 = vor.u32 %v3149_v55, %v2478_v56  ;;  %v2485_v62 = vor.u32 %v3153_v58, %v2484_v57 }
  0x40   :  { %1438 = vmatpush.bf16.msrb.mxu3 %v3270_v4  ;;  %1527 = vmatpush.bf16.msrb.mxu0 %v3278_v13  ;;  %v3156_v4 = vld [vmem:[%s4820_s0 + $0xb4] sm:$0xf]  ;;  %v2526_v13 = vld [vmem:[%s4820_s0 + $0xfc] sm:$0xf0] }
  0x41   :  { %1202 = vmatmul.bf16.gmra.mxu1 %v2581_v5  ;;  %1222 = vmatmul.bf16.gmra.mxu2 %v2693_v6  ;;  %v2506_v5 = vld [vmem:[%s4820_s0 + $0xcc] sm:$0xf0]  ;;  %v2512_v6 = vld [vmem:[%s4820_s0 + $0xb8] sm:$0xf] }
  0x42   :  { %1705 = vmatpush.bf16.msra.mxu2 %v3294_v10  ;;  %1609 = vmatpush.bf16.msra.mxu1 %v3293_v12  ;;  %v2509_v10 = vor.u32 %v3156_v4, %v2506_v5  ;;  %v3162_v12 = vld [vmem:[%s4820_s0 + $0xe4] sm:$0xf]  ;;  %v2596_v5 = vld [vmem:[%s4820_s0 + $0x160] sm:$0xf] }
  0x43   :  { %1242 = vmatmul.bf16.gmra.mxu3 %v2805_v7  ;;  %1182 = vmatmul.bf16.gmra.mxu0 %v2469_v9  ;;  %v3160_v7 = vld [vmem:[%s4820_s0 + $0xd0] sm:$0xf0]  ;;  %v2505_v9 = vor.u32 %v3159_v3, %v2504_v2  ;;  %v2529_v21 = vor.u32 %v3162_v12, %v2526_v13  ;;  %v3177_v2 = vld [vmem:[%s4820_s0 + $0x15c] sm:$0xf]  ;;  %v2590_v3 = vld [vmem:[%s4820_s0 + $0x174] sm:$0xf0] }
  0x44   :  { %v2513_v11 = vor.u32 %v3160_v7, %v2512_v6  ;;  %v3181_v6 = vld [vmem:[%s4820_s0 + $0x178] sm:$0xf0]  ;;  %v2593_v13 = vor.u32 %v3177_v2, %v2590_v3  ;;  %v3190_v3 = vld [vmem:[%s4820_s0 + $0x1c4] sm:$0xf] }
  0x46   :  { %1610 = vmatpush.bf16.msra.mxu1 %v3292_v38  ;;  %v2560_v38 = vld [vmem:[%s4820_s0 + $0x120] sm:$0xf] }
  0x4a   :  { %1611 = vmatpush.bf16.msra.mxu1 %v3291_v63  ;;  %v2582_v63 = vld [vmem:[%s4820_s0 + $0x16c] sm:$0xf0] }
  0x4e   :  { %1612 = vmatpush.bf16.msra.mxu1 %v3290_v31  ;;  %v2616_v31 = vld [vmem:[%s4820_s0 + $0x190] sm:$0xf] }
  0x51   :  { %1207 = vmatmul.bf16.gmra.mxu1 %v2609_v22  ;;  %1227 = vmatmul.bf16.gmra.mxu2 %v2721_v23  ;;  %v2533_v22 = vor.u32 %v3166_v15, %v2532_v14  ;;  %v2597_v15 = vor.u32 %v3181_v6, %v2596_v5  ;;  %v2644_v5 = vld [vmem:[%s4820_s0 + $0x1c8] sm:$0xf]  ;;  %v3194_v6 = vld [vmem:[%s4820_s0 + $0x1e0] sm:$0xf0] }
  0x53   :  { %1247 = vmatmul.bf16.gmra.mxu3 %v2833_v24  ;;  %1187 = vmatmul.bf16.gmra.mxu0 %v2497_v25  ;;  %v2537_v24 = vor.u32 %v3163_v17, %v2534_v18 }
  0x61   :  { %1261 = vmatmul.bf16.vlgmr.msrb.gmra.mxu1 %v2417_v34  ;;  %1350 = vmatmul.bf16.vlgmr.msrb.gmra.mxu2 %v2421_v35 }
  0x63   :  { %1439 = vmatmul.bf16.vlgmr.msrb.gmra.mxu3 %v2425_v36  ;;  %1528 = vmatmul.bf16.vlgmr.msrb.gmra.mxu0 %v2429_v37  ;;  %v3169_v36 = vld [vmem:[%s4820_s0 + $0x11c] sm:$0xf]  ;;  %v2554_v37 = vld [vmem:[%s4820_s0 + $0x134] sm:$0xf0] }
  0x71   :  { %1266 = vmatmul.bf16.gmra.mxu1 %v2445_v47  ;;  %1355 = vmatmul.bf16.gmra.mxu2 %v2449_v48  ;;  %v2557_v47 = vor.u32 %v3169_v36, %v2554_v37  ;;  %v2561_v48 = vor.u32 %v3173_v39, %v2560_v38  ;;  %v3184_v36 = vld [vmem:[%s4820_s0 + $0x194] sm:$0xf]  ;;  %v2618_v37 = vld [vmem:[%s4820_s0 + $0x1ac] sm:$0xf0]  ;;  %v2624_v39 = vld [vmem:[%s4820_s0 + $0x198] sm:$0xf] }
  0x73   :  { %1444 = vmatmul.bf16.gmra.mxu3 %v2453_v49  ;;  %1533 = vmatmul.bf16.gmra.mxu0 %v2457_v50 }
  0x81   :  { %1271 = vmatmul.bf16.gmra.mxu1 %v2473_v59  ;;  %1360 = vmatmul.bf16.gmra.mxu2 %v2477_v60 }
  0x83   :  { %1449 = vmatmul.bf16.gmra.mxu3 %v2481_v61  ;;  %1538 = vmatmul.bf16.gmra.mxu0 %v2485_v62  ;;  %v3176_v62 = vld [vmem:[%s4820_s0 + $0x154] sm:$0xf] }
  0x91   :  { %1276 = vmatmul.bf16.gmra.mxu1 %v2501_v8  ;;  %1365 = vmatmul.bf16.gmra.mxu2 %v2505_v9  ;;  %v2585_v9 = vor.u32 %v3176_v62, %v2582_v63 }
  0x93   :  { %1454 = vmatmul.bf16.gmra.mxu3 %v2509_v10  ;;  %1543 = vmatmul.bf16.gmra.mxu0 %v2513_v11  ;;  %v2589_v10 = vor.u32 %v3180_v1, %v2588_v0 }
  0x9e   :  { %v1193_v23 = vpop.f32.mrf.mxu1 }
  0x9f   :  { %v3896_v25 = vadd.f32 %v3881_v16, %v1193_v23 }
  0xa0   :  { %v3898_v27 = vpop.f32.mrf.mxu0 }
  0xa1   :  { %1281 = vmatmul.bf16.gmra.mxu1 %v2529_v21  ;;  %1370 = vmatmul.bf16.gmra.mxu2 %v2533_v22  ;;  %v3289_v21 = vld [vmem:[%s4821_s1 + $0x158] sm:$0xff] }
  0xa2   :  { %1613 = vmatpush.bf16.msra.mxu1 %v3289_v21  ;;  %v2645_v21 = vor.u32 %v3194_v6, %v2644_v5  ;;  %v2680_v6 = vld [vmem:[%s4820_s0 + $0x208] sm:$0xf] }
  0xa3   :  { %1459 = vmatmul.bf16.gmra.mxu3 %v2537_v24  ;;  %1548 = vmatmul.bf16.gmra.mxu0 %v2541_v26 }
  0xa4   :  { %v1213_v28 = vpop.f32.mrf.mxu2 }
  0xa5   :  { %v3901_v29 = vadd.f32 %v3881_v16, %v1213_v28  ;;  %v3183_v28 = vld [vmem:[%s4820_s0 + $0x18c] sm:$0xf] }
  0xa6   :  { %v1233_v30 = vpop.f32.mrf.mxu3  ;;  %v1195_v32 = vpop.f32.mrf.mxu1 }
  0xa7   :  { %v3907_v33 = vadd.f32 %v3881_v16, %v1233_v30  ;;  %v3910_v34 = vadd.f32 %v3881_v16, %v1195_v32  ;;  %v2610_v30 = vld [vmem:[%s4820_s0 + $0x1a4] sm:$0xf0]  ;;  %v3187_v32 = vld [vmem:[%s4820_s0 + $0x1a8] sm:$0xf0] }
  0xa8   :  { %v3912_v35 = vpop.f32.mrf.mxu0  ;;  %v2613_v43 = vor.u32 %v3183_v28, %v2610_v30  ;;  %v2617_v44 = vor.u32 %v3187_v32, %v2616_v31 }
  0xac   :  { %v1215_v42 = vpop.f32.mrf.mxu2 }
  0xad   :  { %v3939_v45 = vadd.f32 %v3881_v16, %v1215_v42 }
  0xae   :  { %v1235_v46 = vpop.f32.mrf.mxu3  ;;  %v1198_v49 = vpop.f32.mrf.mxu1 }
  0xaf   :  { %v3942_v50 = vadd.f32 %v3881_v16, %v1235_v46  ;;  %v3945_v52 = vadd.f32 %v3881_v16, %v1198_v49 }
  0xb0   :  { %v3947_v54 = vpop.f32.mrf.mxu0 }
  0xb1   :  { %1286 = vmatmul.bf16.gmra.mxu1 %v2557_v47  ;;  %1375 = vmatmul.bf16.gmra.mxu2 %v2561_v48  ;;  %v2621_v48 = vor.u32 %v3184_v36, %v2618_v37  ;;  %v1176_v37 = vadd.f32 %v3881_v16, %v3912_v35  ;;  %v2666_v35 = vld [vmem:[%s4820_s0 + $0x214] sm:$0xf0] }
  0xb3   :  { %1464 = vmatmul.bf16.gmra.mxu3 %v2565_v51  ;;  %1553 = vmatmul.bf16.gmra.mxu0 %v2569_v53  ;;  %v2625_v51 = vor.u32 %v3188_v40, %v2624_v39 }
  0xb4   :  { %v1218_v55 = vpop.f32.mrf.mxu2 }
  0xb5   :  { %v3950_v56 = vadd.f32 %v3881_v16, %v1218_v55  ;;  %v3302_v55 = vld [vmem:[%s4823_s3 + $0x38] sm:$0xff] }
  0xb6   :  { %v1238_v57 = vpop.f32.mrf.mxu3  ;;  %v1200_v58 = vpop.f32.mrf.mxu1  ;;  %1903 = vmatpush.bf16.msra.mxu3 %v3302_v55  ;;  %v3197_v55 = vld [vmem:[%s4820_s0 + $0x1fc] sm:$0xf] }
  0xb7   :  { %v3953_v59 = vadd.f32 %v3881_v16, %v1238_v57  ;;  %v3956_v60 = vadd.f32 %v3881_v16, %v1200_v58 }
  0xb8   :  { %v3958_v61 = vpop.f32.mrf.mxu0 }
  0xbc   :  { %v1220_v4 = vpop.f32.mrf.mxu2 }
  0xbd   :  { %v3985_v7 = vadd.f32 %v3881_v16, %v1220_v4  ;;  %v2638_v4 = vld [vmem:[%s4820_s0 + $0x1dc] sm:$0xf0] }
  0xbe   :  { %v1240_v8 = vpop.f32.mrf.mxu3  ;;  %v1203_v11 = vpop.f32.mrf.mxu1 }
  0xbf   :  { %v3988_v12 = vadd.f32 %v3881_v16, %v1240_v8  ;;  %v3991_v14 = vadd.f32 %v3881_v16, %v1203_v11  ;;  %v1174_v8 = vadd.f32 %v3881_v16, %v3898_v27 }
  0xc0   :  { %v3993_v17 = vpop.f32.mrf.mxu0 }
  0xc1   :  { %1291 = vmatmul.bf16.gmra.mxu1 %v2585_v9  ;;  %1380 = vmatmul.bf16.gmra.mxu2 %v2589_v10  ;;  %v3191_v9 = vld [vmem:[%s4820_s0 + $0x1cc] sm:$0xf]  ;;  %v2646_v10 = vld [vmem:[%s4820_s0 + $0x1e4] sm:$0xf0] }
  0xc2   :  { %v2649_v30 = vor.u32 %v3191_v9, %v2646_v10 }
  0xc3   :  { %1469 = vmatmul.bf16.gmra.mxu3 %v2593_v13  ;;  %1558 = vmatmul.bf16.gmra.mxu0 %v2597_v15  ;;  %v2652_v13 = vld [vmem:[%s4820_s0 + $0x1d0] sm:$0xf]  ;;  %v3195_v15 = vld [vmem:[%s4820_s0 + $0x1e8] sm:$0xf0] }
  0xc4   :  { %v1223_v18 = vpop.f32.mrf.mxu2  ;;  %v2653_v32 = vor.u32 %v3195_v15, %v2652_v13 }
  0xc5   :  { %v3996_v19 = vadd.f32 %v3881_v16, %v1223_v18 }
  0xc6   :  { %v1243_v20 = vpop.f32.mrf.mxu3  ;;  %v1205_v22 = vpop.f32.mrf.mxu1 }
  0xc7   :  { %v4002_v23 = vadd.f32 %v3881_v16, %v1243_v20  ;;  %v4005_v24 = vadd.f32 %v3881_v16, %v1205_v22  ;;  %v2641_v20 = vor.u32 %v3190_v3, %v2638_v4  ;;  %v3198_v3 = vld [vmem:[%s4820_s0 + $0x204] sm:$0xf]  ;;  %v2674_v4 = vld [vmem:[%s4820_s0 + $0x21c] sm:$0xf0] }
  0xc8   :  { %v4007_v26 = vpop.f32.mrf.mxu0  ;;  %v2677_v15 = vor.u32 %v3198_v3, %v2674_v4  ;;  %v2708_v3 = vld [vmem:[%s4820_s0 + $0x240] sm:$0xf]  ;;  %v3209_v4 = vld [vmem:[%s4820_s0 + $0x258] sm:$0xf0] }
  0xcc   :  { %v1225_v38 = vpop.f32.mrf.mxu2 }
  0xcd   :  { %v4034_v41 = vadd.f32 %v3881_v16, %v1225_v38 }
  0xce   :  { %v1245_v42 = vpop.f32.mrf.mxu3  ;;  %v1208_v46 = vpop.f32.mrf.mxu1 }
  0xcf   :  { %v4037_v47 = vadd.f32 %v3881_v16, %v1245_v42  ;;  %v4040_v49 = vadd.f32 %v3881_v16, %v1208_v46  ;;  %v3288_v42 = vld [vmem:[%s4821_s1 + $0x150] sm:$0xff] }
  0xd0   :  { %v4042_v53 = vpop.f32.mrf.mxu0  ;;  %1614 = vmatpush.bf16.msra.mxu1 %v3288_v42 }
  0xd1   :  { %1296 = vmatmul.bf16.gmra.mxu1 %v2613_v43  ;;  %1385 = vmatmul.bf16.gmra.mxu2 %v2617_v44 }
  0xd3   :  { %1474 = vmatmul.bf16.gmra.mxu3 %v2621_v48  ;;  %1563 = vmatmul.bf16.gmra.mxu0 %v2625_v51 }
  0xd4   :  { %v1228_v57 = vpop.f32.mrf.mxu2 }
  0xd5   :  { %v4048_v58 = vadd.f32 %v3881_v16, %v1228_v57  ;;  %v2672_v57 = vld [vmem:[%s4820_s0 + $0x200] sm:$0xf] }
  0xd6   :  { %v1248_v62 = vpop.f32.mrf.mxu3  ;;  %v1210_v63 = vpop.f32.mrf.mxu1 }
  0xd7   :  { %v4051_v0 = vadd.f32 %v3881_v16, %v1248_v62  ;;  %v4054_v1 = vadd.f32 %v3881_v16, %v1210_v63  ;;  %v3201_v62 = vld [vmem:[%s4820_s0 + $0x218] sm:$0xf0]  ;;  %v1179_v63 = vadd.f32 %v3881_v16, %v3947_v54  ;;  %v2669_v54 = vor.u32 %v3197_v55, %v2666_v35  ;;  %v3208_v55 = vld [vmem:[%s4820_s0 + $0x250] sm:$0xf0] }
  0xd8   :  { %v4056_v2 = vpop.f32.mrf.mxu0  ;;  %v1184_v35 = vadd.f32 %v3881_v16, %v3993_v17 }
  0xdc   :  { %v1230_v11 = vpop.f32.mrf.mxu2 }
  0xdd   :  { %v4085_v18 = vadd.f32 %v3881_v16, %v1230_v11  ;;  %v2673_v11 = vor.u32 %v3201_v62, %v2672_v57  ;;  %v3205_v57 = vld [vmem:[%s4820_s0 + $0x23c] sm:$0xf]  ;;  %v2702_v62 = vld [vmem:[%s4820_s0 + $0x254] sm:$0xf0] }
  0xde   :  { %v1250_v27 = vpop.f32.mrf.mxu3  ;;  %v1262_v28 = vpop.f32.mrf.mxu1 }
  0xdf   :  { %v4088_v22 = vadd.f32 %v3881_v16, %v1250_v27  ;;  %v1263_v31 = vadd.f32 %v1262_v28, %v1174_v8  ;;  %v3202_v8 = vld [vmem:[%s4820_s0 + $0x220] sm:$0xf0] }
  0xe0   :  { %v1529_v36 = vpop.f32.mrf.mxu0 }
  0xe1   :  { %1301 = vmatmul.bf16.gmra.mxu1 %v2641_v20  ;;  %1390 = vmatmul.bf16.gmra.mxu2 %v2645_v21  ;;  %v2681_v21 = vor.u32 %v3202_v8, %v2680_v6 }
  0xe3   :  { %1479 = vmatmul.bf16.gmra.mxu3 %v2649_v30  ;;  %1568 = vmatmul.bf16.gmra.mxu0 %v2653_v32  ;;  %v1181_v32 = vadd.f32 %v3881_v16, %v3958_v61  ;;  %v2700_v61 = vld [vmem:[%s4820_s0 + $0x238] sm:$0xf] }
  0xe4   :  { %v1351_v38 = vpop.f32.mrf.mxu2  ;;  %v2701_v8 = vor.u32 %v3208_v55, %v2700_v61  ;;  %v3212_v61 = vld [vmem:[%s4820_s0 + $0x274] sm:$0xf]  ;;  %v2730_v55 = vld [vmem:[%s4820_s0 + $0x28c] sm:$0xf0] }
  0xe5   :  { %v1352_v39 = vadd.f32 %v1351_v38, %v1263_v31  ;;  %v3301_v31 = vld [vmem:[%s4823_s3 + $0x30] sm:$0xff] }
  0xe6   :  { %v1440_v40 = vpop.f32.mrf.mxu3  ;;  %v1264_v43 = vpop.f32.mrf.mxu1  ;;  %1904 = vmatpush.bf16.msra.mxu3 %v3301_v31 }
  0xe7   :  { %v1265_v44 = vadd.f32 %v1264_v43, %v1176_v37  ;;  %v1441_v46 = vadd.f32 %v1440_v40, %v1352_v39 }
  0xe8   :  { %v1531_v48 = vpop.f32.mrf.mxu0 }
  0xe9   :  { %v4095_v51 = vadd.f32 %v1529_v36, %v1441_v46  ;;  %v3204_v46 = vld [vmem:[%s4820_s0 + $0x234] sm:$0xf] }
  0xec   :  { %v1353_v5 = vpop.f32.mrf.mxu2 }
  0xed   :  { %v1354_v9 = vadd.f32 %v1353_v5, %v1265_v44 }
  0xee   :  { %v1442_v10 = vpop.f32.mrf.mxu3  ;;  %v1267_v13 = vpop.f32.mrf.mxu1 }
  0xef   :  { %v1268_v27 = vadd.f32 %v1267_v13, %v1179_v63  ;;  %v1443_v20 = vadd.f32 %v1442_v10, %v1354_v9  ;;  %v2705_v10 = vor.u32 %v3205_v57, %v2702_v62  ;;  %v2709_v13 = vor.u32 %v3209_v4, %v2708_v3  ;;  %v2736_v57 = vld [vmem:[%s4820_s0 + $0x278] sm:$0xf]  ;;  %v3216_v62 = vld [vmem:[%s4820_s0 + $0x290] sm:$0xf0] }
  0xf0   :  { %v1534_v28 = vpop.f32.mrf.mxu0 }
  0xf1   :  { %v4123_v30 = vadd.f32 %v1531_v48, %v1443_v20  ;;  %1306 = vmatmul.bf16.gmra.mxu1 %v2669_v54  ;;  %1395 = vmatmul.bf16.gmra.mxu2 %v2673_v11  ;;  %v2694_v48 = vld [vmem:[%s4820_s0 + $0x24c] sm:$0xf0]  ;;  %v1186_v20 = vadd.f32 %v3881_v16, %v4007_v26  ;;  %v2722_v26 = vld [vmem:[%s4820_s0 + $0x284] sm:$0xf0] }
  0xf2   :  { %v2697_v17 = vor.u32 %v3204_v46, %v2694_v48  ;;  %v3215_v46 = vld [vmem:[%s4820_s0 + $0x288] sm:$0xf0]  ;;  %v1189_v48 = vadd.f32 %v3881_v16, %v4042_v53 }
  0xf3   :  { %1484 = vmatmul.bf16.gmra.mxu3 %v2677_v15  ;;  %1573 = vmatmul.bf16.gmra.mxu0 %v2681_v21 }
  0xf4   :  { %v1356_v36 = vpop.f32.mrf.mxu2 }
  0xf5   :  { %v1357_v37 = vadd.f32 %v1356_v36, %v1268_v27 }
  0xf6   :  { %v1445_v38 = vpop.f32.mrf.mxu3  ;;  %v1269_v39 = vpop.f32.mrf.mxu1 }
  0xf7   :  { %v1270_v40 = vadd.f32 %v1269_v39, %v1181_v32  ;;  %v1446_v42 = vadd.f32 %v1445_v38, %v1357_v37  ;;  %v3287_v32 = vld [vmem:[%s4821_s1 + $0x148] sm:$0xff] }
  0xf8   :  { %v1536_v43 = vpop.f32.mrf.mxu0  ;;  %1615 = vmatpush.bf16.msra.mxu1 %v3287_v32 }
  0xf9   :  { %v4130_v44 = vadd.f32 %v1534_v28, %v1446_v42 }
  0xfc   :  { %v1358_v63 = vpop.f32.mrf.mxu2 }
  0xfd   :  { %v1359_v5 = vadd.f32 %v1358_v63, %v1270_v40  ;;  %v3211_v40 = vld [vmem:[%s4820_s0 + $0x26c] sm:$0xf] }
  0xfe   :  { %v1447_v6 = vpop.f32.mrf.mxu3  ;;  %v1272_v9 = vpop.f32.mrf.mxu1  ;;  %v2725_v53 = vor.u32 %v3211_v40, %v2722_v26  ;;  %v3219_v40 = vld [vmem:[%s4820_s0 + $0x2ac] sm:$0xf] }
  0xff   :  { %v1273_v54 = vadd.f32 %v1272_v9, %v1184_v35  ;;  %v1448_v11 = vadd.f32 %v1447_v6, %v1359_v5  ;;  %v2733_v6 = vor.u32 %v3212_v61, %v2730_v55  ;;  %v2737_v9 = vor.u32 %v3216_v62, %v2736_v57 }
 0x100   :  { %v1539_v15 = vpop.f32.mrf.mxu0 }
 0x101   :  { %v4158_v27 = vadd.f32 %v1536_v43, %v1448_v11  ;;  %1311 = vmatmul.bf16.gmra.mxu1 %v2697_v17  ;;  %1400 = vmatmul.bf16.gmra.mxu2 %v2701_v8  ;;  %v2728_v43 = vld [vmem:[%s4820_s0 + $0x270] sm:$0xf]  ;;  %v1191_v11 = vadd.f32 %v3881_v16, %v4056_v2  ;;  %v2756_v16 = vld [vmem:[%s4820_s0 + $0x2a8] sm:$0xf]  ;;  %v3222_v2 = vld [vmem:[%s4820_s0 + $0x2c0] sm:$0xf0] }
 0x102   :  { %v2729_v4 = vor.u32 %v3215_v46, %v2728_v43  ;;  %v2764_v43 = vld [vmem:[%s4820_s0 + $0x2b0] sm:$0xf]  ;;  %v3223_v46 = vld [vmem:[%s4820_s0 + $0x2c8] sm:$0xf0] }
 0x103   :  { %1489 = vmatmul.bf16.gmra.mxu3 %v2705_v10  ;;  %1578 = vmatmul.bf16.gmra.mxu0 %v2709_v13 }
 0x104   :  { %v1361_v21 = vpop.f32.mrf.mxu2 }
 0x105   :  { %v1362_v28 = vadd.f32 %v1361_v21, %v1273_v54  ;;  %v3300_v54 = vld [vmem:[%s4823_s3 + $0x28] sm:$0xff] }
 0x106   :  { %v1450_v31 = vpop.f32.mrf.mxu3  ;;  %v1274_v36 = vpop.f32.mrf.mxu1  ;;  %1905 = vmatpush.bf16.msra.mxu3 %v3300_v54 }
 0x107   :  { %v1275_v37 = vadd.f32 %v1274_v36, %v1186_v20  ;;  %v1451_v38 = vadd.f32 %v1450_v31, %v1362_v28 }
 0x108   :  { %v1541_v42 = vpop.f32.mrf.mxu0 }
 0x109   :  { %v4165_v39 = vadd.f32 %v1539_v15, %v1451_v38  ;;  %v2750_v38 = vld [vmem:[%s4820_s0 + $0x2bc] sm:$0xf0] }
 0x10c   :  { %v1363_v35 = vpop.f32.mrf.mxu2 }
 0x10d   :  { %v1364_v63 = vadd.f32 %v1363_v35, %v1275_v37  ;;  %v3218_v37 = vld [vmem:[%s4820_s0 + $0x2a4] sm:$0xf]  ;;  %v2757_v35 = vor.u32 %v3222_v2, %v2756_v16 }
 0x10e   :  { %v1452_v3 = vpop.f32.mrf.mxu3  ;;  %v1277_v5 = vpop.f32.mrf.mxu1  ;;  %v2753_v55 = vor.u32 %v3218_v37, %v2750_v38  ;;  %v3230_v37 = vld [vmem:[%s4820_s0 + $0x300] sm:$0xf0] }
 0x10f   :  { %v1278_v17 = vadd.f32 %v1277_v5, %v1189_v48  ;;  %v1453_v8 = vadd.f32 %v1452_v3, %v1364_v63 }
 0x110   :  { %v1544_v15 = vpop.f32.mrf.mxu0 }
 0x111   :  { %v4193_v10 = vadd.f32 %v1541_v42, %v1453_v8  ;;  %1316 = vmatmul.bf16.gmra.mxu1 %v2725_v53  ;;  %1405 = vmatmul.bf16.gmra.mxu2 %v2729_v4  ;;  %v2758_v42 = vld [vmem:[%s4820_s0 + $0x2c4] sm:$0xf0]  ;;  %v2765_v4 = vor.u32 %v3223_v46, %v2764_v43 }
 0x112   :  { %v2761_v63 = vor.u32 %v3219_v40, %v2758_v42 }
 0x113   :  { %1494 = vmatmul.bf16.gmra.mxu3 %v2733_v6  ;;  %1583 = vmatmul.bf16.gmra.mxu0 %v2737_v9  ;;  %v3286_v9 = vld [vmem:[%s4821_s1 + $0x140] sm:$0xff] }
 0x114   :  { %v1366_v13 = vpop.f32.mrf.mxu2  ;;  %1616 = vmatpush.bf16.msra.mxu1 %v3286_v9  ;;  %v3237_v9 = vld [vmem:[%s4820_s0 + $0x338] sm:$0xf0] }
 0x115   :  { %v1367_v20 = vadd.f32 %v1366_v13, %v1278_v17 }
 0x116   :  { %v1455_v21 = vpop.f32.mrf.mxu3  ;;  %v1279_v28 = vpop.f32.mrf.mxu1 }
 0x117   :  { %v1280_v31 = vadd.f32 %v1279_v28, %v1191_v11  ;;  %v1456_v32 = vadd.f32 %v1455_v21, %v1367_v20  ;;  %v2784_v20 = vld [vmem:[%s4820_s0 + $0x2e0] sm:$0xf]  ;;  %v3229_v21 = vld [vmem:[%s4820_s0 + $0x2f8] sm:$0xf0] }
 0x118   :  { %v1546_v62 = vpop.f32.mrf.mxu0  ;;  %v2786_v28 = vld [vmem:[%s4820_s0 + $0x2fc] sm:$0xf0]  ;;  %v2785_v40 = vor.u32 %v3229_v21, %v2784_v20 }
 0x119   :  { %v4200_v36 = vadd.f32 %v1544_v15, %v1456_v32  ;;  %v2778_v15 = vld [vmem:[%s4820_s0 + $0x2f4] sm:$0xf0]  ;;  %v2792_v32 = vld [vmem:[%s4820_s0 + $0x2e8] sm:$0xf] }
 0x11a   :  { %v2793_v46 = vor.u32 %v3230_v37, %v2792_v32 }
 0x11c   :  { %v1368_v26 = vpop.f32.mrf.mxu2 }
 0x11d   :  { %v1369_v48 = vadd.f32 %v1368_v26, %v1280_v31 }
 0x11e   :  { %v1457_v61 = vpop.f32.mrf.mxu3  ;;  %v1282_v57 = vpop.f32.mrf.mxu1 }
 0x11f   :  { %v1283_v3 = vadd.f32 %v1282_v57, %v3896_v25  ;;  %v1458_v53 = vadd.f32 %v1457_v61, %v1369_v48  ;;  %v3225_v25 = vld [vmem:[%s4820_s0 + $0x2dc] sm:$0xf]  ;;  %v3299_v48 = vld [vmem:[%s4823_s3 + $0x20] sm:$0xff] }
 0x120   :  { %v2781_v2 = vor.u32 %v3225_v25, %v2778_v15  ;;  %1906 = vmatpush.bf16.msra.mxu3 %v3299_v48  ;;  %v2842_v48 = vld [vmem:[%s4820_s0 + $0x36c] sm:$0xf0] }
 0x121   :  { %v4227_v5 = vadd.f32 %v1546_v62, %v1458_v53  ;;  %1321 = vmatmul.bf16.gmra.mxu1 %v2753_v55  ;;  %1410 = vmatmul.bf16.gmra.mxu2 %v2757_v35  ;;  %v2812_v53 = vld [vmem:[%s4820_s0 + $0x318] sm:$0xf] }
 0x123   :  { %1499 = vmatmul.bf16.gmra.mxu3 %v2761_v63  ;;  %1588 = vmatmul.bf16.gmra.mxu0 %v2765_v4  ;;  %v3236_v4 = vld [vmem:[%s4820_s0 + $0x330] sm:$0xf0] }
 0x124   :  { %v1371_v6 = vpop.f32.mrf.mxu2  ;;  %v2813_v15 = vor.u32 %v3236_v4, %v2812_v53 }
 0x125   :  { %v1372_v17 = vadd.f32 %v1371_v6, %v1283_v3  ;;  %v2806_v3 = vld [vmem:[%s4820_s0 + $0x32c] sm:$0xf0]  ;;  %v2814_v6 = vld [vmem:[%s4820_s0 + $0x334] sm:$0xf0] }
 0x126   :  { %v1460_v8 = vpop.f32.mrf.mxu3  ;;  %v1284_v54 = vpop.f32.mrf.mxu1 }
 0x127   :  { %v1285_v11 = vadd.f32 %v1284_v54, %v3910_v34  ;;  %v4233_v13 = vadd.f32 %v1460_v8, %v1372_v17  ;;  %v3226_v34 = vld [vmem:[%s4820_s0 + $0x2e4] sm:$0xf]  ;;  %v2820_v8 = vld [vmem:[%s4820_s0 + $0x320] sm:$0xf] }
 0x128   :  { %v2789_v26 = vor.u32 %v3226_v34, %v2786_v28  ;;  %v2821_v28 = vor.u32 %v3237_v9, %v2820_v8 }
 0x12c   :  { %v1373_v31 = vpop.f32.mrf.mxu2 }
 0x12d   :  { %v4259_v38 = vadd.f32 %v1373_v31, %v1285_v11 }
 0x12e   :  { %v4261_v16 = vpop.f32.mrf.mxu3  ;;  %v1287_v42 = vpop.f32.mrf.mxu1 }
 0x12f   :  { %v1288_v43 = vadd.f32 %v1287_v42, %v3945_v52  ;;  %v3232_v52 = vld [vmem:[%s4820_s0 + $0x314] sm:$0xf] }
 0x130   :  { %v2809_v25 = vor.u32 %v3232_v52, %v2806_v3 }
 0x131   :  { %1326 = vmatmul.bf16.gmra.mxu1 %v2781_v2  ;;  %1415 = vmatmul.bf16.gmra.mxu2 %v2785_v40 }
 0x133   :  { %1504 = vmatmul.bf16.gmra.mxu3 %v2789_v26  ;;  %1593 = vmatmul.bf16.gmra.mxu0 %v2793_v46  ;;  %v3239_v26 = vld [vmem:[%s4820_s0 + $0x34c] sm:$0xf] }
 0x134   :  { %v1376_v61 = vpop.f32.mrf.mxu2  ;;  %v3243_v46 = vld [vmem:[%s4820_s0 + $0x368] sm:$0xf0] }
 0x135   :  { %v1377_v55 = vadd.f32 %v1376_v61, %v1288_v43  ;;  %v2840_v43 = vld [vmem:[%s4820_s0 + $0x350] sm:$0xf] }
 0x136   :  { %v1465_v35 = vpop.f32.mrf.mxu3  ;;  %v1289_v57 = vpop.f32.mrf.mxu1  ;;  %v2841_v3 = vor.u32 %v3243_v46, %v2840_v43 }
 0x137   :  { %v1290_v62 = vadd.f32 %v1289_v57, %v3956_v60  ;;  %v4268_v63 = vadd.f32 %v1465_v35, %v1377_v55  ;;  %v3233_v60 = vld [vmem:[%s4820_s0 + $0x31c] sm:$0xf]  ;;  %v2848_v55 = vld [vmem:[%s4820_s0 + $0x358] sm:$0xf]  ;;  %v3244_v35 = vld [vmem:[%s4820_s0 + $0x370] sm:$0xf0] }
 0x138   :  { %v2817_v21 = vor.u32 %v3233_v60, %v2814_v6  ;;  %v2849_v6 = vor.u32 %v3244_v35, %v2848_v55  ;;  %v3143_v35 = vld [vmem:[%s4820_s0 + $0x4c] sm:$0xf] }
 0x13c   :  { %v1378_v17 = vpop.f32.mrf.mxu2 }
 0x13d   :  { %v4294_v54 = vadd.f32 %v1378_v17, %v1290_v62  ;;  %v3298_v17 = vld [vmem:[%s4823_s3 + $0x18] sm:$0xff] }
 0x13e   :  { %v4296_v11 = vpop.f32.mrf.mxu3  ;;  %v1292_v20 = vpop.f32.mrf.mxu1  ;;  %1907 = vmatpush.bf16.msra.mxu3 %v3298_v17 }
 0x13f   :  { %v1293_v34 = vadd.f32 %v1292_v20, %v3991_v14  ;;  %v2834_v14 = vld [vmem:[%s4820_s0 + $0x364] sm:$0xf0] }
 0x140   :  { %v2837_v52 = vor.u32 %v3239_v26, %v2834_v14 }
 0x141   :  { %1331 = vmatmul.bf16.gmra.mxu1 %v2809_v25  ;;  %1420 = vmatmul.bf16.gmra.mxu2 %v2813_v15 }
 0x143   :  { %1509 = vmatmul.bf16.gmra.mxu3 %v2817_v21  ;;  %1598 = vmatmul.bf16.gmra.mxu0 %v2821_v28  ;;  %v2436_v28 = vld [vmem:[%s4820_s0 + $0x18] sm:$0xf] }
 0x144   :  { %v1381_v31 = vpop.f32.mrf.mxu2 }
 0x145   :  { %v1382_v32 = vadd.f32 %v1381_v31, %v1293_v34  ;;  %v2430_v34 = vld [vmem:[%s4820_s0 + $0x2c] sm:$0xf0]  ;;  %v3140_v31 = vld [vmem:[%s4820_s0 + $0x30] sm:$0xf0] }
 0x146   :  { %v1470_v37 = vpop.f32.mrf.mxu3  ;;  %v1294_v2 = vpop.f32.mrf.mxu1 }
 0x147   :  { %v1295_v40 = vadd.f32 %v1294_v2, %v4005_v24  ;;  %v4300_v42 = vadd.f32 %v1470_v37, %v1382_v32  ;;  %v3240_v24 = vld [vmem:[%s4820_s0 + $0x354] sm:$0xf] }
 0x148   :  { %v2845_v4 = vor.u32 %v3240_v24, %v2842_v48 }
 0x14c   :  { %v1383_v61 = vpop.f32.mrf.mxu2 }
 0x14d   :  { %v4326_v57 = vadd.f32 %v1383_v61, %v1295_v40  ;;  %v2437_v40 = vor.u32 %v3140_v31, %v2436_v28 }
 0x14e   :  { %v4328_v62 = vpop.f32.mrf.mxu3  ;;  %v1297_v53 = vpop.f32.mrf.mxu1 }
 0x14f   :  { %v1298_v60 = vadd.f32 %v1297_v53, %v4040_v49  ;;  %v3136_v49 = vld [vmem:[%s4820_s0 + $0x14] sm:$0xf] }
 0x150   :  { %v2433_v2 = vor.u32 %v3136_v49, %v2430_v34 }
 0x151   :  { %1336 = vmatmul.bf16.gmra.mxu1 %v2837_v52  ;;  %1425 = vmatmul.bf16.gmra.mxu2 %v2841_v3  ;;  %v3310_v52 = vld [vmem:[%s4825_s5 + $0x38] sm:$0xff]  ;;  %v2464_v3 = vld [vmem:[%s4820_s0 + $0x50] sm:$0xf] }
 0x152   :  { %2252 = vmatpush.bf16.msra.mxu0 %v3310_v52 }
 0x153   :  { %1514 = vmatmul.bf16.gmra.mxu3 %v2845_v4  ;;  %1603 = vmatmul.bf16.gmra.mxu0 %v2849_v6 }
 0x154   :  { %v1386_v8 = vpop.f32.mrf.mxu2 }
 0x155   :  { %v1387_v9 = vadd.f32 %v1386_v8, %v1298_v60 }
 0x156   :  { %v1475_v25 = vpop.f32.mrf.mxu3  ;;  %v1299_v15 = vpop.f32.mrf.mxu1 }
 0x157   :  { %v1300_v20 = vadd.f32 %v1299_v15, %v4054_v1  ;;  %v4335_v21 = vadd.f32 %v1475_v25, %v1387_v9  ;;  %v3297_v25 = vld [vmem:[%s4823_s3 + $0x10] sm:$0xff] }
 0x158   :  { %1908 = vmatpush.bf16.msra.mxu3 %v3297_v25 }
 0x15c   :  { %v1388_v32 = vpop.f32.mrf.mxu2 }
 0x15d   :  { %v4349_v1 = vadd.f32 %v1388_v32, %v1300_v20  ;;  %v2486_v32 = vld [vmem:[%s4820_s0 + $0x9c] sm:$0xf0] }
 0x15e   :  { %v4351_v37 = vpop.f32.mrf.mxu3  ;;  %v1302_v26 = vpop.f32.mrf.mxu1 }
 0x15f   :  { %v1303_v14 = vadd.f32 %v1302_v26, %v3901_v29  ;;  %v2458_v29 = vld [vmem:[%s4820_s0 + $0x64] sm:$0xf0] }
 0x160   :  { %v2461_v6 = vor.u32 %v3143_v35, %v2458_v29 }
 0x161   :  { %1617 = vmatmul.bf16.vlgmr.msra.gmra.mxu1 %v2433_v2  ;;  %3054 = vmatmul.msk.bf16.vlgmr.msra.gmra.mxu2 %vm1115_vm0, %v2437_v40  ;;  %v2492_v2 = vld [vmem:[%s4820_s0 + $0x88] sm:$0xf]  ;;  %v3154_v40 = vld [vmem:[%s4820_s0 + $0xa0] sm:$0xf0] }
 0x164   :  { %v1391_v43 = vpop.f32.mrf.mxu2 }
 0x165   :  { %v1392_v46 = vadd.f32 %v1391_v43, %v1303_v14 }
 0x166   :  { %v1480_v24 = vpop.f32.mrf.mxu3  ;;  %v1304_v48 = vpop.f32.mrf.mxu1 }
 0x167   :  { %v1305_v61 = vadd.f32 %v1304_v48, %v3939_v45  ;;  %v4356_v55 = vadd.f32 %v1480_v24, %v1392_v46  ;;  %v3147_v45 = vld [vmem:[%s4820_s0 + $0x68] sm:$0xf0]  ;;  %v2493_v46 = vor.u32 %v3154_v40, %v2492_v2 }
 0x168   :  { %v2465_v17 = vor.u32 %v3147_v45, %v2464_v3 }
 0x16c   :  { %v1393_v53 = vpop.f32.mrf.mxu2 }
 0x16d   :  { %v4373_v4 = vadd.f32 %v1393_v53, %v1305_v61  ;;  %v3157_v53 = vld [vmem:[%s4820_s0 + $0xbc] sm:$0xf] }
 0x16e   :  { %v4375_v60 = vpop.f32.mrf.mxu3  ;;  %v1307_v8 = vpop.f32.mrf.mxu1 }
 0x16f   :  { %v1308_v9 = vadd.f32 %v1307_v8, %v3950_v56  ;;  %v3150_v56 = vld [vmem:[%s4820_s0 + $0x84] sm:$0xf] }
 0x170   :  { %v2489_v43 = vor.u32 %v3150_v56, %v2486_v32 }
 0x171   :  { %1622 = vmatmul.bf16.gmra.mxu1 %v2461_v6  ;;  %3055 = vmatmul.msk.bf16.gmra.mxu2 %vm1115_vm0, %v2465_v17  ;;  %v3309_v6 = vld [vmem:[%s4825_s5 + $0x30] sm:$0xff]  ;;  %v2520_v17 = vld [vmem:[%s4820_s0 + $0xc0] sm:$0xf] }
 0x172   :  { %2253 = vmatpush.bf16.msra.mxu0 %v3309_v6 }
 0x174   :  { %v1396_v15 = vpop.f32.mrf.mxu2 }
 0x175   :  { %v1397_v20 = vadd.f32 %v1396_v15, %v1308_v9 }
 0x176   :  { %v1485_v49 = vpop.f32.mrf.mxu3  ;;  %v1309_v34 = vpop.f32.mrf.mxu1 }
 0x177   :  { %v1310_v28 = vadd.f32 %v1309_v34, %v3985_v7  ;;  %v4383_v31 = vadd.f32 %v1485_v49, %v1397_v20 }
 0x17c   :  { %v1398_v26 = vpop.f32.mrf.mxu2 }
 0x17d   :  { %v4397_v7 = vadd.f32 %v1398_v26, %v1310_v28  ;;  %v3296_v28 = vld [vmem:[%s4823_s3 + $0x8] sm:$0xff] }
 0x17e   :  { %v4399_v14 = vpop.f32.mrf.mxu3  ;;  %v1312_v24 = vpop.f32.mrf.mxu1  ;;  %1909 = vmatpush.bf16.msra.mxu3 %v3296_v28 }
 0x17f   :  { %v1313_v48 = vadd.f32 %v1312_v24, %v3996_v19  ;;  %v2514_v19 = vld [vmem:[%s4820_s0 + $0xd4] sm:$0xf0] }
 0x180   :  { %v2517_v15 = vor.u32 %v3157_v53, %v2514_v19  ;;  %v2548_v24 = vld [vmem:[%s4820_s0 + $0xf8] sm:$0xf] }
 0x181   :  { %1627 = vmatmul.bf16.gmra.mxu1 %v2489_v43  ;;  %3056 = vmatmul.msk.bf16.gmra.mxu2 %vm1115_vm0, %v2493_v46  ;;  %v2542_v46 = vld [vmem:[%s4820_s0 + $0x10c] sm:$0xf0] }
 0x184   :  { %v1401_v61 = vpop.f32.mrf.mxu2 }
 0x185   :  { %v1402_v35 = vadd.f32 %v1401_v61, %v1313_v48  ;;  %v3168_v48 = vld [vmem:[%s4820_s0 + $0x110] sm:$0xf0] }
 0x186   :  { %v1490_v52 = vpop.f32.mrf.mxu3  ;;  %v1314_v29 = vpop.f32.mrf.mxu1 }
 0x187   :  { %v1315_v3 = vadd.f32 %v1314_v29, %v4034_v41  ;;  %v4404_v45 = vadd.f32 %v1490_v52, %v1402_v35  ;;  %v3161_v41 = vld [vmem:[%s4820_s0 + $0xd8] sm:$0xf0]  ;;  %v2549_v29 = vor.u32 %v3168_v48, %v2548_v24 }
 0x188   :  { %v2521_v20 = vor.u32 %v3161_v41, %v2520_v17 }
 0x18c   :  { %v1403_v8 = vpop.f32.mrf.mxu2 }
 0x18d   :  { %v4421_v9 = vadd.f32 %v1403_v8, %v1315_v3 }
 0x18e   :  { %v4423_v25 = vpop.f32.mrf.mxu3  ;;  %v1317_v49 = vpop.f32.mrf.mxu1 }
 0x18f   :  { %v1318_v34 = vadd.f32 %v1317_v49, %v4048_v58  ;;  %v3164_v58 = vld [vmem:[%s4820_s0 + $0xf4] sm:$0xf]  ;;  %v3308_v49 = vld [vmem:[%s4825_s5 + $0x28] sm:$0xff] }
 0x190   :  { %v2545_v52 = vor.u32 %v3164_v58, %v2542_v46  ;;  %2254 = vmatpush.bf16.msra.mxu0 %v3308_v49  ;;  %v3295_v46 = vld [vmem:[%s4823_s3] sm:$0xff] }
 0x191   :  { %1632 = vmatmul.bf16.gmra.mxu1 %v2517_v15  ;;  %3057 = vmatmul.msk.bf16.gmra.mxu2 %vm1115_vm0, %v2521_v20  ;;  %v3171_v20 = vld [vmem:[%s4820_s0 + $0x12c] sm:$0xf] }
 0x192   :  { %1910 = vmatpush.bf16.msra.mxu3 %v3295_v46  ;;  %v3185_v46 = vld [vmem:[%s4820_s0 + $0x19c] sm:$0xf] }
 0x194   :  { %v1406_v56 = vpop.f32.mrf.mxu2 }
 0x195   :  { %v1407_v32 = vadd.f32 %v1406_v56, %v1318_v34  ;;  %v2576_v34 = vld [vmem:[%s4820_s0 + $0x130] sm:$0xf] }
 0x196   :  { %v1495_v2 = vpop.f32.mrf.mxu3  ;;  %v1319_v40 = vpop.f32.mrf.mxu1 }
 0x197   :  { %v1320_v26 = vadd.f32 %v1319_v40, %v4085_v18  ;;  %v4431_v43 = vadd.f32 %v1495_v2, %v1407_v32 }
 0x19c   :  { %v1408_v61 = vpop.f32.mrf.mxu2 }
 0x19d   :  { %v4445_v18 = vadd.f32 %v1408_v61, %v1320_v26 }
 0x19e   :  { %v4447_v35 = vpop.f32.mrf.mxu3  ;;  %v1322_v3 = vpop.f32.mrf.mxu1 }
 0x19f   :  { %v1323_v53 = vadd.f32 %v1322_v3, %v3907_v33  ;;  %v2570_v33 = vld [vmem:[%s4820_s0 + $0x144] sm:$0xf0] }
 0x1a0   :  { %v2573_v2 = vor.u32 %v3171_v20, %v2570_v33 }
 0x1a1   :  { %1637 = vmatmul.bf16.gmra.mxu1 %v2545_v52  ;;  %3058 = vmatmul.msk.bf16.gmra.mxu2 %vm1115_vm0, %v2549_v29 }
 0x1a4   :  { %v1411_v6 = vpop.f32.mrf.mxu2 }
 0x1a5   :  { %v1412_v19 = vadd.f32 %v1411_v6, %v1323_v53  ;;  %v2598_v53 = vld [vmem:[%s4820_s0 + $0x17c] sm:$0xf0]  ;;  %v2604_v6 = vld [vmem:[%s4820_s0 + $0x168] sm:$0xf] }
 0x1a6   :  { %v1500_v17 = vpop.f32.mrf.mxu3  ;;  %v1324_v41 = vpop.f32.mrf.mxu1 }
 0x1a7   :  { %v1325_v8 = vadd.f32 %v1324_v41, %v3942_v50  ;;  %v4452_v15 = vadd.f32 %v1500_v17, %v1412_v19  ;;  %v3175_v50 = vld [vmem:[%s4820_s0 + $0x148] sm:$0xf0]  ;;  %v3182_v19 = vld [vmem:[%s4820_s0 + $0x180] sm:$0xf0] }
 0x1a8   :  { %v2577_v40 = vor.u32 %v3175_v50, %v2576_v34  ;;  %v2605_v20 = vor.u32 %v3182_v19, %v2604_v6 }
 0x1ac   :  { %v1413_v28 = vpop.f32.mrf.mxu2 }
 0x1ad   :  { %v4469_v56 = vadd.f32 %v1413_v28, %v1325_v8 }
 0x1ae   :  { %v4471_v32 = vpop.f32.mrf.mxu3  ;;  %v1327_v26 = vpop.f32.mrf.mxu1 }
 0x1af   :  { %v1328_v58 = vadd.f32 %v1327_v26, %v3953_v59  ;;  %v3178_v59 = vld [vmem:[%s4820_s0 + $0x164] sm:$0xf] }
 0x1b0   :  { %v2601_v8 = vor.u32 %v3178_v59, %v2598_v53 }
 0x1b1   :  { %1642 = vmatmul.bf16.gmra.mxu1 %v2573_v2  ;;  %3059 = vmatmul.msk.bf16.gmra.mxu2 %vm1115_vm0, %v2577_v40 }
 0x1b4   :  { %v1416_v24 = vpop.f32.mrf.mxu2 }
 0x1b5   :  { %v1417_v48 = vadd.f32 %v1416_v24, %v1328_v58  ;;  %v3307_v58 = vld [vmem:[%s4825_s5 + $0x20] sm:$0xff] }
 0x1b6   :  { %v1505_v61 = vpop.f32.mrf.mxu3  ;;  %v1329_v52 = vpop.f32.mrf.mxu1  ;;  %2255 = vmatpush.bf16.msra.mxu0 %v3307_v58  ;;  %v2632_v24 = vld [vmem:[%s4820_s0 + $0x1a0] sm:$0xf] }
 0x1b7   :  { %v1330_v29 = vadd.f32 %v1329_v52, %v3988_v12  ;;  %v4479_v3 = vadd.f32 %v1505_v61, %v1417_v48 }
 0x1bc   :  { %v1418_v17 = vpop.f32.mrf.mxu2 }
 0x1bd   :  { %v4493_v12 = vadd.f32 %v1418_v17, %v1330_v29 }
 0x1be   :  { %v4495_v41 = vpop.f32.mrf.mxu3  ;;  %v1332_v49 = vpop.f32.mrf.mxu1 }
 0x1bf   :  { %v1333_v33 = vadd.f32 %v1332_v49, %v4002_v23  ;;  %v2626_v23 = vld [vmem:[%s4820_s0 + $0x1b4] sm:$0xf0] }
 0x1c0   :  { %v2629_v29 = vor.u32 %v3185_v46, %v2626_v23 }
 0x1c1   :  { %1647 = vmatmul.bf16.gmra.mxu1 %v2601_v8  ;;  %3060 = vmatmul.msk.bf16.gmra.mxu2 %vm1115_vm0, %v2605_v20 }
 0x1c4   :  { %v1421_v34 = vpop.f32.mrf.mxu2 }
 0x1c5   :  { %v1422_v50 = vadd.f32 %v1421_v34, %v1333_v33  ;;  %v3192_v34 = vld [vmem:[%s4820_s0 + $0x1d4] sm:$0xf] }
 0x1c6   :  { %v1510_v28 = vpop.f32.mrf.mxu3  ;;  %v1334_v2 = vpop.f32.mrf.mxu1 }
 0x1c7   :  { %v1335_v40 = vadd.f32 %v1334_v2, %v4037_v47  ;;  %v4500_v26 = vadd.f32 %v1510_v28, %v1422_v50  ;;  %v3189_v47 = vld [vmem:[%s4820_s0 + $0x1b8] sm:$0xf0]  ;;  %v2654_v50 = vld [vmem:[%s4820_s0 + $0x1ec] sm:$0xf0]  ;;  %v3196_v28 = vld [vmem:[%s4820_s0 + $0x1f0] sm:$0xf0] }
 0x1c8   :  { %v2633_v59 = vor.u32 %v3189_v47, %v2632_v24  ;;  %v3306_v47 = vld [vmem:[%s4825_s5 + $0x18] sm:$0xff] }
 0x1c9   :  { %2256 = vmatpush.bf16.msra.mxu0 %v3306_v47  ;;  %v2716_v47 = vld [vmem:[%s4820_s0 + $0x248] sm:$0xf] }
 0x1cc   :  { %v1423_v48 = vpop.f32.mrf.mxu2 }
 0x1cd   :  { %v4517_v61 = vadd.f32 %v1423_v48, %v1335_v40  ;;  %v2657_v40 = vor.u32 %v3192_v34, %v2654_v50  ;;  %v4558_v50 = vpop.f32.mrf.mxu0 }
 0x1ce   :  { %v4519_v52 = vpop.f32.mrf.mxu3  ;;  %v1337_v53 = vpop.f32.mrf.mxu1 }
 0x1cf   :  { %v1338_v6 = vadd.f32 %v1337_v53, %v4051_v0  ;;  %v2660_v0 = vld [vmem:[%s4820_s0 + $0x1d8] sm:$0xf]  ;;  %v2688_v53 = vld [vmem:[%s4820_s0 + $0x210] sm:$0xf] }
 0x1d0   :  { %v2661_v58 = vor.u32 %v3196_v28, %v2660_v0 }
 0x1d1   :  { %1652 = vmatmul.bf16.gmra.mxu1 %v2629_v29  ;;  %3061 = vmatmul.msk.bf16.gmra.mxu2 %vm1115_vm0, %v2633_v59  ;;  %v3199_v29 = vld [vmem:[%s4820_s0 + $0x20c] sm:$0xf]  ;;  %v2682_v59 = vld [vmem:[%s4820_s0 + $0x224] sm:$0xf0] }
 0x1d4   :  { %v1426_v19 = vpop.f32.mrf.mxu2 }
 0x1d5   :  { %v1427_v17 = vadd.f32 %v1426_v19, %v1338_v6  ;;  %v3203_v6 = vld [vmem:[%s4820_s0 + $0x228] sm:$0xf0] }
 0x1d6   :  { %v1515_v8 = vpop.f32.mrf.mxu3  ;;  %v1339_v20 = vpop.f32.mrf.mxu1 }
 0x1d7   :  { %v1340_v49 = vadd.f32 %v1339_v20, %v4088_v22  ;;  %v4524_v33 = vadd.f32 %v1515_v8, %v1427_v17  ;;  %v2685_v20 = vor.u32 %v3199_v29, %v2682_v59 }
 0x1dc   :  { %v1428_v2 = vpop.f32.mrf.mxu2 }
 0x1dd   :  { %v4538_v22 = vadd.f32 %v1428_v2, %v1340_v49  ;;  %v2689_v49 = vor.u32 %v3203_v6, %v2688_v53 }
 0x1de   :  { %v1618_v46 = vpop.f32.mrf.mxu1 }
 0x1df   :  { %v1619_v48 = vadd.f32 %v1618_v46, %v4095_v51  ;;  %v4561_v46 = vpop.f32.mrf.mxu0 }
 0x1e1   :  { %1657 = vmatmul.bf16.gmra.mxu1 %v2657_v40  ;;  %3062 = vmatmul.msk.bf16.gmra.mxu2 %vm1115_vm0, %v2661_v58 }
 0x1e4   :  { %v1707_v23 = vpop.f32.mrf.mxu2 }
 0x1e5   :  { %v1708_v19 = vadd.f32 %v1707_v23, %v1619_v48  ;;  %v3206_v23 = vld [vmem:[%s4820_s0 + $0x244] sm:$0xf] }
 0x1e6   :  { %v1620_v24 = vpop.f32.mrf.mxu1  ;;  %v3210_v48 = vld [vmem:[%s4820_s0 + $0x260] sm:$0xf0] }
 0x1e7   :  { %v1621_v51 = vadd.f32 %v1620_v24, %v4123_v30  ;;  %v1787_v0 = vmax.f32 %v1708_v19, 0.0  ;;  %v2710_v24 = vld [vmem:[%s4820_s0 + $0x25c] sm:$0xf0]  ;;  %v2717_v19 = vor.u32 %v3210_v48, %v2716_v47 }
 0x1e8   :  { %v2713_v6 = vor.u32 %v3206_v23, %v2710_v24 }
 0x1ec   :  { %v1709_v17 = vpop.f32.mrf.mxu2 }
 0x1ed   :  { %v1710_v8 = vadd.f32 %v1709_v17, %v1621_v51 }
 0x1ee   :  { %v1623_v34 = vpop.f32.mrf.mxu1 }
 0x1ef   :  { %v1788_v28 = vmax.f32 %v1710_v8, 0.0  ;;  %v1624_v30 = vadd.f32 %v1623_v34, %v4130_v44 }
 0x1f1   :  { %v1819_v2 = vpack.c.bf16 %v1788_v28, %v1787_v0  ;;  %1662 = vmatmul.bf16.gmra.mxu1 %v2685_v20  ;;  %3063 = vmatmul.msk.bf16.gmra.mxu2 %vm1115_vm0, %v2689_v49  ;;  %v4578_v49 = vpop.f32.mrf.mxu0 }
 0x1f3   :  { %1911 = vmatmul.bf16.vlgmr.msra.gmra.mxu3 %v1819_v2  ;;  %v3213_v2 = vld [vmem:[%s4820_s0 + $0x27c] sm:$0xf] }
 0x1f4   :  { %v1712_v40 = vpop.f32.mrf.mxu2 }
 0x1f5   :  { %v1713_v29 = vadd.f32 %v1712_v40, %v1624_v30  ;;  %v2738_v40 = vld [vmem:[%s4820_s0 + $0x294] sm:$0xf0]  ;;  %v3217_v30 = vld [vmem:[%s4820_s0 + $0x298] sm:$0xf0] }
 0x1f6   :  { %v1625_v58 = vpop.f32.mrf.mxu1 }
 0x1f7   :  { %v1626_v59 = vadd.f32 %v1625_v58, %v4158_v27  ;;  %v1789_v17 = vmax.f32 %v1713_v29, 0.0  ;;  %v3305_v27 = vld [vmem:[%s4825_s5 + $0x10] sm:$0xff]  ;;  %v2744_v58 = vld [vmem:[%s4820_s0 + $0x280] sm:$0xf]  ;;  %v2741_v29 = vor.u32 %v3213_v2, %v2738_v40 }
 0x1f8   :  { %2257 = vmatpush.bf16.msra.mxu0 %v3305_v27  ;;  %v3224_v27 = vld [vmem:[%s4820_s0 + $0x2d0] sm:$0xf0] }
 0x1f9   :  { %v4597_v47 = vpop.f32.mrf.mxu0 }
 0x1fc   :  { %v1714_v44 = vpop.f32.mrf.mxu2 }
 0x1fd   :  { %v1715_v53 = vadd.f32 %v1714_v44, %v1626_v59  ;;  %v2745_v59 = vor.u32 %v3217_v30, %v2744_v58 }
 0x1fe   :  { %v1628_v51 = vpop.f32.mrf.mxu1 }
 0x1ff   :  { %v1790_v8 = vmax.f32 %v1715_v53, 0.0  ;;  %v1629_v28 = vadd.f32 %v1628_v51, %v4165_v39 }
 0x201   :  { %1667 = vmatmul.bf16.gmra.mxu1 %v2713_v6  ;;  %3064 = vmatmul.msk.bf16.gmra.mxu2 %vm1115_vm0, %v2717_v19  ;;  %v1820_v20 = vpack.c.bf16 %v1790_v8, %v1789_v17  ;;  %v4600_v8 = vpop.f32.mrf.mxu0 }
 0x203   :  { %1916 = vmatmul.bf16.gmra.mxu3 %v1820_v20  ;;  %v3220_v20 = vld [vmem:[%s4820_s0 + $0x2b4] sm:$0xf] }
 0x204   :  { %v1717_v34 = vpop.f32.mrf.mxu2 }
 0x205   :  { %v1718_v23 = vadd.f32 %v1717_v34, %v1629_v28  ;;  %v2766_v34 = vld [vmem:[%s4820_s0 + $0x2cc] sm:$0xf0] }
 0x206   :  { %v1630_v0 = vpop.f32.mrf.mxu1  ;;  %v2769_v58 = vor.u32 %v3220_v20, %v2766_v34 }
 0x207   :  { %v1631_v39 = vadd.f32 %v1630_v0, %v4193_v10  ;;  %v1791_v53 = vmax.f32 %v1718_v23, 0.0  ;;  %v2772_v0 = vld [vmem:[%s4820_s0 + $0x2b8] sm:$0xf] }
 0x208   :  { %v2773_v30 = vor.u32 %v3224_v27, %v2772_v0 }
 0x20c   :  { %v1719_v24 = vpop.f32.mrf.mxu2 }
 0x20d   :  { %v1720_v48 = vadd.f32 %v1719_v24, %v1631_v39 }
 0x20e   :  { %v1633_v44 = vpop.f32.mrf.mxu1 }
 0x20f   :  { %v1792_v6 = vmax.f32 %v1720_v48, 0.0  ;;  %v1634_v10 = vadd.f32 %v1633_v44, %v4200_v36  ;;  %v1561_v48 = vpop.f32.mrf.mxu0  ;;  %v1463_v44 = vadd.f32 %v4261_v16, %v4259_v38  ;;  %v2794_v38 = vld [vmem:[%s4820_s0 + $0x304] sm:$0xf0]  ;;  %v3231_v16 = vld [vmem:[%s4820_s0 + $0x308] sm:$0xf0] }
 0x211   :  { %1672 = vmatmul.bf16.gmra.mxu1 %v2741_v29  ;;  %3065 = vmatmul.msk.bf16.gmra.mxu2 %vm1115_vm0, %v2745_v59  ;;  %v1821_v19 = vpack.c.bf16 %v1792_v6, %v1791_v53  ;;  %v3304_v6 = vld [vmem:[%s4825_s5 + $0x8] sm:$0xff] }
 0x212   :  { %2258 = vmatpush.bf16.msra.mxu0 %v3304_v6 }
 0x213   :  { %1921 = vmatmul.bf16.gmra.mxu3 %v1821_v19  ;;  %v1552_v19 = vadd.f32 %v4561_v46, %v1463_v44  ;;  %v3234_v44 = vld [vmem:[%s4820_s0 + $0x324] sm:$0xf] }
 0x214   :  { %v1722_v51 = vpop.f32.mrf.mxu2 }
 0x215   :  { %v1723_v28 = vadd.f32 %v1722_v51, %v1634_v10 }
 0x216   :  { %v1635_v17 = vpop.f32.mrf.mxu1 }
 0x217   :  { %v1636_v2 = vadd.f32 %v1635_v17, %v4227_v5  ;;  %v1793_v39 = vmax.f32 %v1723_v28, 0.0  ;;  %v1550_v5 = vadd.f32 %v4558_v50, %v4233_v13  ;;  %v3227_v17 = vld [vmem:[%s4820_s0 + $0x2ec] sm:$0xf]  ;;  %v2800_v13 = vld [vmem:[%s4820_s0 + $0x2f0] sm:$0xf]  ;;  %v4637_v50 = vpop.f32.mrf.mxu0 }
 0x218   :  { %v2797_v0 = vor.u32 %v3227_v17, %v2794_v38  ;;  %v2801_v27 = vor.u32 %v3231_v16, %v2800_v13 }
 0x21c   :  { %v1724_v36 = vpop.f32.mrf.mxu2 }
 0x21d   :  { %v1725_v40 = vadd.f32 %v1724_v36, %v1636_v2 }
 0x21e   :  { %v1638_v23 = vpop.f32.mrf.mxu1 }
 0x21f   :  { %v1794_v24 = vmax.f32 %v1725_v40, 0.0  ;;  %v1639_v51 = vadd.f32 %v1638_v23, %v1550_v5  ;;  %v1566_v23 = vpop.f32.mrf.mxu0 }
 0x221   :  { %1677 = vmatmul.bf16.gmra.mxu1 %v2769_v58  ;;  %3066 = vmatmul.msk.bf16.gmra.mxu2 %vm1115_vm0, %v2773_v30  ;;  %v1822_v29 = vpack.c.bf16 %v1794_v24, %v1793_v39  ;;  %v1468_v30 = vadd.f32 %v4296_v11, %v4294_v54  ;;  %v1555_v24 = vadd.f32 %v4578_v49, %v4268_v63  ;;  %v2828_v54 = vld [vmem:[%s4820_s0 + $0x328] sm:$0xf]  ;;  %v3238_v11 = vld [vmem:[%s4820_s0 + $0x340] sm:$0xf0] }
 0x223   :  { %1926 = vmatmul.bf16.gmra.mxu3 %v1822_v29  ;;  %v1557_v29 = vadd.f32 %v4597_v47, %v1468_v30 }
 0x224   :  { %v1727_v59 = vpop.f32.mrf.mxu2 }
 0x225   :  { %v1728_v46 = vadd.f32 %v1727_v59, %v1639_v51 }
 0x226   :  { %v1640_v53 = vpop.f32.mrf.mxu1 }
 0x227   :  { %v1641_v10 = vadd.f32 %v1640_v53, %v1552_v19  ;;  %v1795_v2 = vmax.f32 %v1728_v46, 0.0  ;;  %v2822_v53 = vld [vmem:[%s4820_s0 + $0x33c] sm:$0xf0]  ;;  %v2829_v19 = vor.u32 %v3238_v11, %v2828_v54  ;;  %v1569_v17 = vpop.f32.mrf.mxu0  ;;  %v1478_v11 = vadd.f32 %v4351_v37, %v4349_v1 }
 0x228   :  { %v2825_v6 = vor.u32 %v3234_v44, %v2822_v53  ;;  %v1483_v1 = vadd.f32 %v4375_v60, %v4373_v4  ;;  %v1488_v4 = vadd.f32 %v4399_v14, %v4397_v7 }
 0x22c   :  { %v1729_v20 = vpop.f32.mrf.mxu2 }
 0x22d   :  { %v1730_v34 = vadd.f32 %v1729_v20, %v1641_v10  ;;  %v1473_v10 = vadd.f32 %v4328_v62, %v4326_v57  ;;  %v2850_v57 = vld [vmem:[%s4820_s0 + $0x374] sm:$0xf0]  ;;  %v3245_v62 = vld [vmem:[%s4820_s0 + $0x378] sm:$0xf0] }
 0x22e   :  { %v1643_v28 = vpop.f32.mrf.mxu1 }
 0x22f   :  { %v1796_v36 = vmax.f32 %v1730_v34, 0.0  ;;  %v1644_v59 = vadd.f32 %v1643_v28, %v1555_v24  ;;  %v1560_v34 = vadd.f32 %v4600_v8, %v4300_v42  ;;  %v1571_v28 = vpop.f32.mrf.mxu0  ;;  %v2856_v42 = vld [vmem:[%s4820_s0 + $0x360] sm:$0xf] }
 0x231   :  { %v1823_v40 = vpack.c.bf16 %v1796_v36, %v1795_v2  ;;  %1682 = vmatmul.bf16.gmra.mxu1 %v2797_v0  ;;  %3067 = vmatmul.msk.bf16.gmra.mxu2 %vm1115_vm0, %v2801_v27  ;;  %v3303_v0 = vld [vmem:[%s4825_s5] sm:$0xff]  ;;  %v1562_v27 = vadd.f32 %v1561_v48, %v1473_v10  ;;  %v3241_v36 = vld [vmem:[%s4820_s0 + $0x35c] sm:$0xf] }
 0x232   :  { %2259 = vmatpush.bf16.msra.mxu0 %v3303_v0  ;;  %v2853_v30 = vor.u32 %v3241_v36, %v2850_v57  ;;  %v1570_v0 = vadd.f32 %v1569_v17, %v4356_v55  ;;  %v4692_v55 = vld [vmem:[%s4824_s4] ss:$0 sm:$0xff] }
 0x233   :  { %1931 = vmatmul.bf16.gmra.mxu3 %v1823_v40 }
 0x234   :  { %v1732_v58 = vpop.f32.mrf.mxu2 }
 0x235   :  { %v1733_v63 = vadd.f32 %v1732_v58, %v1644_v59 }
 0x236   :  { %v1645_v39 = vpop.f32.mrf.mxu1 }
 0x237   :  { %v1646_v49 = vadd.f32 %v1645_v39, %v1557_v29  ;;  %v1797_v38 = vmax.f32 %v1733_v63, 0.0  ;;  %v2857_v39 = vor.u32 %v3245_v62, %v2856_v42  ;;  %v1574_v53 = vpop.f32.mrf.mxu0  ;;  %v4685_v42 = vpop.f32.mrf.mxu3 }
 0x23c   :  { %v1734_v47 = vpop.f32.mrf.mxu2 }
 0x23d   :  { %v1735_v5 = vadd.f32 %v1734_v47, %v1646_v49  ;;  %v1565_v49 = vadd.f32 %v4637_v50, %v4335_v21  ;;  %v1567_v47 = vadd.f32 %v1566_v23, %v1478_v11  ;;  %v1572_v50 = vadd.f32 %v1571_v28, %v1483_v1 }
 0x23e   :  { %v1648_v51 = vpop.f32.mrf.mxu1  ;;  %v1575_v28 = vadd.f32 %v1574_v53, %v4383_v31 }
 0x23f   :  { %v1798_v13 = vmax.f32 %v1735_v5, 0.0  ;;  %v1649_v2 = vadd.f32 %v1648_v51, %v1560_v34 }
 0x241   :  { %v1824_v16 = vpack.c.bf16 %v1798_v13, %v1797_v38  ;;  %1687 = vmatmul.bf16.gmra.mxu1 %v2825_v6  ;;  %3068 = vmatmul.msk.bf16.gmra.mxu2 %vm1115_vm0, %v2829_v19  ;;  %v1576_v38 = vpop.f32.mrf.mxu0 }
 0x243   :  { %1936 = vmatmul.bf16.gmra.mxu3 %v1824_v16 }
 0x244   :  { %v1737_v46 = vpop.f32.mrf.mxu2 }
 0x245   :  { %v1738_v8 = vadd.f32 %v1737_v46, %v1649_v2 }
 0x246   :  { %v1650_v20 = vpop.f32.mrf.mxu1 }
 0x247   :  { %v1651_v48 = vadd.f32 %v1650_v20, %v1562_v27  ;;  %v1799_v29 = vmax.f32 %v1738_v8, 0.0 }
 0x249   :  { %v1579_v21 = vpop.f32.mrf.mxu0 }
 0x24c   :  { %v1739_v40 = vpop.f32.mrf.mxu2 }
 0x24d   :  { %v1740_v58 = vadd.f32 %v1739_v40, %v1651_v48 }
 0x24e   :  { %v1653_v24 = vpop.f32.mrf.mxu1 }
 0x24f   :  { %v1800_v59 = vmax.f32 %v1740_v58, 0.0  ;;  %v1654_v5 = vadd.f32 %v1653_v24, %v1565_v49 }
 0x251   :  { %v1825_v44 = vpack.c.bf16 %v1800_v59, %v1799_v29  ;;  %1692 = vmatmul.bf16.gmra.mxu1 %v2853_v30  ;;  %3069 = vmatmul.msk.bf16.gmra.mxu2 %vm1115_vm0, %v2857_v39  ;;  %v1581_v40 = vpop.f32.mrf.mxu0  ;;  %v1577_v39 = vadd.f32 %v1576_v38, %v1488_v4 }
 0x253   :  { %1941 = vmatmul.bf16.gmra.mxu3 %v1825_v44 }
 0x254   :  { %v1742_v54 = vpop.f32.mrf.mxu2 }
 0x255   :  { %v1743_v6 = vadd.f32 %v1742_v54, %v1654_v5 }
 0x256   :  { %v1655_v63 = vpop.f32.mrf.mxu1 }
 0x257   :  { %v1656_v19 = vadd.f32 %v1655_v63, %v1567_v47  ;;  %v1801_v46 = vmax.f32 %v1743_v6, 0.0 }
 0x259   :  { %v1584_v59 = vpop.f32.mrf.mxu0 }
 0x25c   :  { %v1744_v51 = vpop.f32.mrf.mxu2 }
 0x25d   :  { %v1745_v13 = vadd.f32 %v1744_v51, %v1656_v19 }
 0x25e   :  { %v1658_v16 = vpop.f32.mrf.mxu1 }
 0x25f   :  { %v1802_v10 = vmax.f32 %v1745_v13, 0.0  ;;  %v1659_v23 = vadd.f32 %v1658_v16, %v1570_v0  ;;  %v1493_v16 = vadd.f32 %v4423_v25, %v4421_v9 }
 0x261   :  { %v1826_v20 = vpack.c.bf16 %v1802_v10, %v1801_v46  ;;  %v1586_v46 = vpop.f32.mrf.mxu0 }
 0x263   :  { %1946 = vmatmul.bf16.gmra.mxu3 %v1826_v20 }
 0x264   :  { %v1747_v34 = vpop.f32.mrf.mxu2 }
 0x265   :  { %v1748_v27 = vadd.f32 %v1747_v34, %v1659_v23 }
 0x266   :  { %v1660_v37 = vpop.f32.mrf.mxu1 }
 0x267   :  { %v1661_v2 = vadd.f32 %v1660_v37, %v1572_v50  ;;  %v1803_v8 = vmax.f32 %v1748_v27, 0.0  ;;  %v1580_v37 = vadd.f32 %v1579_v21, %v4404_v45  ;;  %v1582_v50 = vadd.f32 %v1581_v40, %v1493_v16 }
 0x26c   :  { %v1749_v36 = vpop.f32.mrf.mxu2 }
 0x26d   :  { %v1750_v57 = vadd.f32 %v1749_v36, %v1661_v2 }
 0x26e   :  { %v1663_v62 = vpop.f32.mrf.mxu1 }
 0x26f   :  { %v1804_v48 = vmax.f32 %v1750_v57, 0.0  ;;  %v1664_v24 = vadd.f32 %v1663_v62, %v1575_v28 }
 0x271   :  { %v1827_v58 = vpack.c.bf16 %v1804_v48, %v1803_v8  ;;  %v1589_v48 = vpop.f32.mrf.mxu0 }
 0x273   :  { %1951 = vmatmul.bf16.gmra.mxu3 %v1827_v58 }
 0x274   :  { %v1752_v30 = vpop.f32.mrf.mxu2 }
 0x275   :  { %v1753_v44 = vadd.f32 %v1752_v30, %v1664_v24 }
 0x276   :  { %v1665_v60 = vpop.f32.mrf.mxu1  ;;  %v1912_v17 = vpop.f32.mrf.mxu3 }
 0x277   :  { %v1913_v29 = vadd.f32 %v4692_v55, %v1912_v17  ;;  %v1666_v54 = vadd.f32 %v1665_v60, %v1577_v39  ;;  %v1805_v47 = vmax.f32 %v1753_v44, 0.0  ;;  %v1498_v39 = vadd.f32 %v4447_v35, %v4445_v18 }
 0x279   :  { %v1992_v63 = vmax.f32 %v1913_v29, 0.0 }
 0x27b   :  { %v2024_v19 = vpack.c.bf16 %v1992_v63, %v1992_v63 }
 0x27c   :  { %v1754_v11 = vpop.f32.mrf.mxu2 }
 0x27d   :  { %v1755_v49 = vadd.f32 %v1754_v11, %v1666_v54  ;;  %v2140_v10 = vunpack.c.l.b16 %v2024_v19  ;;  %v1585_v11 = vadd.f32 %v1584_v59, %v4431_v43 }
 0x27e   :  { %v1668_v7 = vpop.f32.mrf.mxu1  ;;  %v1914_v14 = vpop.f32.mrf.mxu3 }
 0x27f   :  { %v1806_v5 = vmax.f32 %v1755_v49, 0.0  ;;  %v1915_v6 = vadd.f32 %v4692_v55, %v1914_v14  ;;  %v1669_v23 = vadd.f32 %v1668_v7, %v1580_v37  ;;  %v1587_v49 = vadd.f32 %v1586_v46, %v1498_v39  ;;  %v1591_v7 = vpop.f32.mrf.mxu0 }
 0x281   :  { %v1828_v51 = vpack.c.bf16 %v1806_v5, %v1805_v47  ;;  %v1993_v13 = vmax.f32 %v1915_v6, 0.0 }
 0x283   :  { %v2025_v31 = vpack.c.bf16 %v1993_v13, %v1993_v13  ;;  %v3314_v53 = vpack.c.bf16 %v1993_v13, %v1992_v63  ;;  %1956 = vmatmul.bf16.gmra.mxu3 %v1828_v51 }
 0x284   :  { %v1757_v38 = vpop.f32.mrf.mxu2 }
 0x285   :  { %3315 = vst [vmem:[#allocation2] sm:$0xff] %v3314_v53   ;;  %v2141_v20 = vunpack.c.l.b16 %v2025_v31  ;;  %v1758_v2 = vadd.f32 %v1757_v38, %v1669_v23 }
 0x286   :  { %v1670_v34 = vpop.f32.mrf.mxu1  ;;  %v1917_v1 = vpop.f32.mrf.mxu3 }
 0x287   :  { %v2172_v0 = vpack.c.b16 %v2141_v20, %v2140_v10  ;;  %v1918_v27 = vadd.f32 %v4692_v55, %v1917_v1  ;;  %v1671_v36 = vadd.f32 %v1670_v34, %v1582_v50  ;;  %v1807_v58 = vmax.f32 %v1758_v2, 0.0  ;;  %v1594_v46 = vpop.f32.mrf.mxu0 }
 0x288   :  { %v1503_v1 = vadd.f32 %v4471_v32, %v4469_v56 }
 0x289   :  { %2260 = vmatmul.bf16.vlgmr.msra.gmra.mxu0 %v2172_v0  ;;  %v1994_v62 = vmax.f32 %v1918_v27, 0.0  ;;  %v1590_v27 = vadd.f32 %v1589_v48, %v4452_v15 }
 0x28b   :  { %v2026_v60 = vpack.c.bf16 %v1994_v62, %v1994_v62 }
 0x28c   :  { %v1759_v57 = vpop.f32.mrf.mxu2 }
 0x28d   :  { %v1760_v8 = vadd.f32 %v1759_v57, %v1671_v36  ;;  %v2142_v24 = vunpack.c.l.b16 %v2026_v60  ;;  %v1592_v36 = vadd.f32 %v1591_v7, %v1503_v1 }
 0x28e   :  { %v1673_v9 = vpop.f32.mrf.mxu1  ;;  %v1919_v25 = vpop.f32.mrf.mxu3 }
 0x28f   :  { %v1808_v30 = vmax.f32 %v1760_v8, 0.0  ;;  %v1920_v4 = vadd.f32 %v4692_v55, %v1919_v25  ;;  %v1674_v14 = vadd.f32 %v1673_v9, %v1585_v11 }
 0x291   :  { %v1829_v45 = vpack.c.bf16 %v1808_v30, %v1807_v58  ;;  %v1995_v21 = vmax.f32 %v1920_v4, 0.0  ;;  %v1596_v58 = vpop.f32.mrf.mxu0 }
 0x293   :  { %v2027_v40 = vpack.c.bf16 %v1995_v21, %v1995_v21  ;;  %v3319_v17 = vpack.c.bf16 %v1995_v21, %v1994_v62  ;;  %1961 = vmatmul.bf16.gmra.mxu3 %v1829_v45 }
 0x294   :  { %v1762_v28 = vpop.f32.mrf.mxu2 }
 0x295   :  { %3391 = vst [vmem:[#allocation2 + $0x8] sm:$0xff] %v3319_v17   ;;  %v2143_v29 = vunpack.c.l.b16 %v2027_v40  ;;  %v1763_v5 = vadd.f32 %v1762_v28, %v1674_v14 }
 0x296   :  { %v1675_v44 = vpop.f32.mrf.mxu1  ;;  %v1922_v54 = vpop.f32.mrf.mxu3 }
 0x297   :  { %v2173_v63 = vpack.c.b16 %v2143_v29, %v2142_v24  ;;  %v1923_v47 = vadd.f32 %v4692_v55, %v1922_v54  ;;  %v1676_v6 = vadd.f32 %v1675_v44, %v1587_v49  ;;  %v1809_v31 = vmax.f32 %v1763_v5, 0.0 }
 0x298   :  { %v1508_v24 = vadd.f32 %v4495_v41, %v4493_v12 }
 0x299   :  { %2265 = vmatmul.bf16.gmra.mxu0 %v2173_v63  ;;  %v1996_v51 = vmax.f32 %v1923_v47, 0.0  ;;  %v1595_v63 = vadd.f32 %v1594_v46, %v4479_v3  ;;  %v1599_v7 = vpop.f32.mrf.mxu0 }
 0x29a   :  { %v1597_v14 = vadd.f32 %v1596_v58, %v1508_v24 }
 0x29b   :  { %v2028_v16 = vpack.c.bf16 %v1996_v51, %v1996_v51 }
 0x29c   :  { %v1764_v19 = vpop.f32.mrf.mxu2 }
 0x29d   :  { %v1765_v13 = vadd.f32 %v1764_v19, %v1676_v6  ;;  %v2144_v37 = vunpack.c.l.b16 %v2028_v16 }
 0x29e   :  { %v1678_v18 = vpop.f32.mrf.mxu1  ;;  %v1924_v35 = vpop.f32.mrf.mxu3 }
 0x29f   :  { %v1810_v53 = vmax.f32 %v1765_v13, 0.0  ;;  %v1925_v38 = vadd.f32 %v4692_v55, %v1924_v35  ;;  %v1679_v57 = vadd.f32 %v1678_v18, %v1590_v27 }
 0x2a1   :  { %v1830_v43 = vpack.c.bf16 %v1810_v53, %v1809_v31  ;;  %v1997_v59 = vmax.f32 %v1925_v38, 0.0 }
 0x2a3   :  { %v2029_v10 = vpack.c.bf16 %v1997_v59, %v1997_v59  ;;  %v3324_v20 = vpack.c.bf16 %v1997_v59, %v1996_v51  ;;  %1966 = vmatmul.bf16.gmra.mxu3 %v1830_v43  ;;  %v1601_v43 = vpop.f32.mrf.mxu0 }
 0x2a4   :  { %v1767_v34 = vpop.f32.mrf.mxu2 }
 0x2a5   :  { %3392 = vst [vmem:[#allocation2 + $0x10] sm:$0xff] %v3324_v20   ;;  %v2145_v0 = vunpack.c.l.b16 %v2029_v10  ;;  %v1768_v8 = vadd.f32 %v1767_v34, %v1679_v57  ;;  %v1513_v20 = vadd.f32 %v4519_v52, %v4517_v61 }
 0x2a6   :  { %v1680_v50 = vpop.f32.mrf.mxu1  ;;  %v1927_v23 = vpop.f32.mrf.mxu3 }
 0x2a7   :  { %v2174_v2 = vpack.c.b16 %v2145_v0, %v2144_v37  ;;  %v1928_v62 = vadd.f32 %v4692_v55, %v1927_v23  ;;  %v1681_v9 = vadd.f32 %v1680_v50, %v1592_v36  ;;  %v1811_v60 = vmax.f32 %v1768_v8, 0.0 }
 0x2a8   :  { %v1600_v50 = vadd.f32 %v1599_v7, %v4500_v26  ;;  %v1602_v27 = vadd.f32 %v1601_v43, %v1513_v20 }
 0x2a9   :  { %2270 = vmatmul.bf16.gmra.mxu0 %v2174_v2  ;;  %v1998_v30 = vmax.f32 %v1928_v62, 0.0 }
 0x2ab   :  { %v2030_v40 = vpack.c.bf16 %v1998_v30, %v1998_v30  ;;  %v1604_v8 = vpop.f32.mrf.mxu0 }
 0x2ac   :  { %v1769_v25 = vpop.f32.mrf.mxu2  ;;  %v1605_v24 = vadd.f32 %v1604_v8, %v4524_v33 }
 0x2ad   :  { %v1770_v4 = vadd.f32 %v1769_v25, %v1681_v9  ;;  %v2146_v29 = vunpack.c.l.b16 %v2030_v40 }
 0x2ae   :  { %v1683_v56 = vpop.f32.mrf.mxu1  ;;  %v1929_v32 = vpop.f32.mrf.mxu3 }
 0x2af   :  { %v1812_v45 = vmax.f32 %v1770_v4, 0.0  ;;  %v1930_v21 = vadd.f32 %v4692_v55, %v1929_v32  ;;  %v1684_v47 = vadd.f32 %v1683_v56, %v1595_v63 }
 0x2b1   :  { %v1831_v15 = vpack.c.bf16 %v1812_v45, %v1811_v60  ;;  %v1999_v48 = vmax.f32 %v1930_v21, 0.0 }
 0x2b3   :  { %v2031_v17 = vpack.c.bf16 %v1999_v48, %v1999_v48  ;;  %v3329_v28 = vpack.c.bf16 %v1999_v48, %v1998_v30  ;;  %1971 = vmatmul.bf16.gmra.mxu3 %v1831_v15  ;;  %v1518_v15 = vadd.f32 %v4685_v42, %v4538_v22 }
 0x2b4   :  { %v1772_v39 = vpop.f32.mrf.mxu2 }
 0x2b5   :  { %3393 = vst [vmem:[#allocation2 + $0x18] sm:$0xff] %v3329_v28   ;;  %v2147_v44 = vunpack.c.l.b16 %v2031_v17  ;;  %v1773_v6 = vadd.f32 %v1772_v39, %v1684_v47  ;;  %v1606_v28 = vpop.f32.mrf.mxu0 }
 0x2b6   :  { %v1685_v54 = vpop.f32.mrf.mxu1  ;;  %v1932_v11 = vpop.f32.mrf.mxu3 }
 0x2b7   :  { %v2175_v49 = vpack.c.b16 %v2147_v44, %v2146_v29  ;;  %v1933_v5 = vadd.f32 %v4692_v55, %v1932_v11  ;;  %v1686_v19 = vadd.f32 %v1685_v54, %v1597_v14  ;;  %v1813_v35 = vmax.f32 %v1773_v6, 0.0 }
 0x2b8   :  { %v1607_v54 = vadd.f32 %v1606_v28, %v1518_v15 }
 0x2b9   :  { %2275 = vmatmul.bf16.gmra.mxu0 %v2175_v49  ;;  %v2000_v13 = vmax.f32 %v1933_v5, 0.0 }
 0x2bb   :  { %v2032_v38 = vpack.c.bf16 %v2000_v13, %v2000_v13 }
 0x2bc   :  { %v1774_v51 = vpop.f32.mrf.mxu2 }
 0x2bd   :  { %v1775_v18 = vadd.f32 %v1774_v51, %v1686_v19  ;;  %v2148_v34 = vunpack.c.l.b16 %v2032_v38 }
 0x2be   :  { %v1688_v12 = vpop.f32.mrf.mxu1  ;;  %v1934_v41 = vpop.f32.mrf.mxu3 }
 0x2bf   :  { %v1814_v31 = vmax.f32 %v1775_v18, 0.0  ;;  %v1935_v53 = vadd.f32 %v4692_v55, %v1934_v41  ;;  %v1689_v2 = vadd.f32 %v1688_v12, %v1600_v50 }
 0x2c1   :  { %v1832_v3 = vpack.c.bf16 %v1814_v31, %v1813_v35  ;;  %v2001_v16 = vmax.f32 %v1935_v53, 0.0 }
 0x2c3   :  { %v2033_v59 = vpack.c.bf16 %v2001_v16, %v2001_v16  ;;  %v3334_v46 = vpack.c.bf16 %v2001_v16, %v2000_v13  ;;  %1976 = vmatmul.bf16.gmra.mxu3 %v1832_v3 }
 0x2c4   :  { %v1777_v10 = vpop.f32.mrf.mxu2 }
 0x2c5   :  { %3394 = vst [vmem:[#allocation2 + $0x20] sm:$0xff] %v3334_v46   ;;  %v2149_v1 = vunpack.c.l.b16 %v2033_v59  ;;  %v1778_v57 = vadd.f32 %v1777_v10, %v1689_v2 }
 0x2c6   :  { %v1690_v37 = vpop.f32.mrf.mxu1  ;;  %v1937_v0 = vpop.f32.mrf.mxu3 }
 0x2c7   :  { %v2176_v23 = vpack.c.b16 %v2149_v1, %v2148_v34  ;;  %v1938_v36 = vadd.f32 %v4692_v55, %v1937_v0  ;;  %v1691_v62 = vadd.f32 %v1690_v37, %v1602_v27  ;;  %v1815_v30 = vmax.f32 %v1778_v57, 0.0 }
 0x2c9   :  { %2280 = vmatmul.bf16.gmra.mxu0 %v2176_v23  ;;  %v2002_v25 = vmax.f32 %v1938_v36, 0.0 }
 0x2cb   :  { %v2034_v32 = vpack.c.bf16 %v2002_v25, %v2002_v25 }
 0x2cc   :  { %v1779_v9 = vpop.f32.mrf.mxu2 }
 0x2cd   :  { %v1780_v58 = vadd.f32 %v1779_v9, %v1691_v62  ;;  %v2150_v48 = vunpack.c.l.b16 %v2034_v32  ;;  %v4734_v9 = vld [vmem:[%s4826_s6] ss:$0 sm:$0xff] }
 0x2ce   :  { %v1693_v61 = vpop.f32.mrf.mxu1  ;;  %v1939_v52 = vpop.f32.mrf.mxu3 }
 0x2cf   :  { %v1816_v4 = vmax.f32 %v1780_v58, 0.0  ;;  %v1940_v56 = vadd.f32 %v4692_v55, %v1939_v52  ;;  %v1694_v11 = vadd.f32 %v1693_v61, %v1605_v24 }
 0x2d1   :  { %v1833_v26 = vpack.c.bf16 %v1816_v4, %v1815_v30  ;;  %v2003_v60 = vmax.f32 %v1940_v56, 0.0 }
 0x2d3   :  { %v2035_v45 = vpack.c.bf16 %v2003_v60, %v2003_v60  ;;  %v3339_v21 = vpack.c.bf16 %v2003_v60, %v2002_v25  ;;  %1981 = vmatmul.bf16.gmra.mxu3 %v1833_v26 }
 0x2d4   :  { %v1782_v40 = vpop.f32.mrf.mxu2 }
 0x2d5   :  { %3395 = vst [vmem:[#allocation2 + $0x28] sm:$0xff] %v3339_v21   ;;  %v2151_v17 = vunpack.c.l.b16 %v2035_v45  ;;  %v1783_v49 = vadd.f32 %v1782_v40, %v1694_v11 }
 0x2d6   :  { %v1942_v39 = vpop.f32.mrf.mxu3  ;;  %v1695_v44 = vpop.f32.mrf.mxu1 }
 0x2d7   :  { %v2177_v29 = vpack.c.b16 %v2151_v17, %v2150_v48  ;;  %v1943_v63 = vadd.f32 %v4692_v55, %v1942_v39  ;;  %v1696_v7 = vadd.f32 %v1695_v44, %v1607_v54  ;;  %v1817_v42 = vmax.f32 %v1783_v49, 0.0 }
 0x2d9   :  { %2285 = vmatmul.bf16.gmra.mxu0 %v2177_v29  ;;  %v2004_v47 = vmax.f32 %v1943_v63, 0.0 }
 0x2db   :  { %v2036_v51 = vpack.c.bf16 %v2004_v47, %v2004_v47 }
 0x2dc   :  { %v1784_v14 = vpop.f32.mrf.mxu2 }
 0x2dd   :  { %v1785_v5 = vadd.f32 %v1784_v14, %v1696_v7  ;;  %v2152_v41 = vunpack.c.l.b16 %v2036_v51 }
 0x2de   :  { %v1944_v22 = vpop.f32.mrf.mxu3 }
 0x2df   :  { %v1818_v6 = vmax.f32 %v1785_v5, 0.0  ;;  %v1945_v19 = vadd.f32 %v4692_v55, %v1944_v22 }
 0x2e1   :  { %v1834_v13 = vpack.c.bf16 %v1818_v6, %v1817_v42  ;;  %v2005_v33 = vmax.f32 %v1945_v19, 0.0 }
 0x2e3   :  { %v2037_v18 = vpack.c.bf16 %v2005_v33, %v2005_v33  ;;  %v3344_v12 = vpack.c.bf16 %v2005_v33, %v2004_v47  ;;  %1986 = vmatmul.bf16.gmra.mxu3 %v1834_v13 }
 0x2e5   :  { %3396 = vst [vmem:[#allocation2 + $0x30] sm:$0xff] %v3344_v12   ;;  %v2153_v35 = vunpack.c.l.b16 %v2037_v18 }
 0x2e6   :  { %v1947_v31 = vpop.f32.mrf.mxu3 }
 0x2e7   :  { %v2178_v53 = vpack.c.b16 %v2153_v35, %v2152_v41  ;;  %v1948_v38 = vadd.f32 %v4692_v55, %v1947_v31 }
 0x2e9   :  { %2290 = vmatmul.bf16.gmra.mxu0 %v2178_v53  ;;  %v2006_v3 = vmax.f32 %v1948_v38, 0.0 }
 0x2eb   :  { %v2038_v59 = vpack.c.bf16 %v2006_v3, %v2006_v3 }
 0x2ed   :  { %v2154_v34 = vunpack.c.l.b16 %v2038_v59 }
 0x2ee   :  { %v1949_v16 = vpop.f32.mrf.mxu3 }
 0x2ef   :  { %v1950_v43 = vadd.f32 %v4692_v55, %v1949_v16 }
 0x2f1   :  { %v2007_v46 = vmax.f32 %v1950_v43, 0.0 }
 0x2f3   :  { %v2039_v10 = vpack.c.bf16 %v2007_v46, %v2007_v46  ;;  %v3349_v20 = vpack.c.bf16 %v2007_v46, %v2006_v3 }
 0x2f5   :  { %3397 = vst [vmem:[#allocation2 + $0x38] sm:$0xff] %v3349_v20   ;;  %v2155_v1 = vunpack.c.l.b16 %v2039_v10 }
 0x2f6   :  { %v1952_v37 = vpop.f32.mrf.mxu3 }
 0x2f7   :  { %v2179_v0 = vpack.c.b16 %v2155_v1, %v2154_v34  ;;  %v1953_v50 = vadd.f32 %v4692_v55, %v1952_v37 }
 0x2f9   :  { %2295 = vmatmul.bf16.gmra.mxu0 %v2179_v0  ;;  %v2008_v23 = vmax.f32 %v1953_v50, 0.0 }
 0x2fb   :  { %v2040_v36 = vpack.c.bf16 %v2008_v23, %v2008_v23 }
 0x2fd   :  { %v2156_v25 = vunpack.c.l.b16 %v2040_v36 }
 0x2fe   :  { %v1954_v27 = vpop.f32.mrf.mxu3 }
 0x2ff   :  { %v1955_v2 = vadd.f32 %v4692_v55, %v1954_v27 }
 0x301   :  { %v2009_v57 = vmax.f32 %v1955_v2, 0.0 }
 0x303   :  { %v2041_v62 = vpack.c.bf16 %v2009_v57, %v2009_v57  ;;  %v3354_v8 = vpack.c.bf16 %v2009_v57, %v2008_v23 }
 0x305   :  { %3398 = vst [vmem:[#allocation2 + $0x40] sm:$0xff] %v3354_v8   ;;  %v2157_v58 = vunpack.c.l.b16 %v2041_v62 }
 0x306   :  { %v1957_v61 = vpop.f32.mrf.mxu3  ;;  %v2261_v52 = vpop.f32.mrf.mxu0 }
 0x307   :  { %v2262_v30 = vadd.f32 %v4734_v9, %v2261_v52  ;;  %v2180_v4 = vpack.c.b16 %v2157_v58, %v2156_v25  ;;  %v1958_v56 = vadd.f32 %v4692_v55, %v1957_v61 }
 0x309   :  { %2342 = vst.msk [vmem:[#allocation4] sm:$0xff] %vm2341_vm1, %v2262_v30  ;;  %2300 = vmatmul.bf16.gmra.mxu0 %v2180_v4  ;;  %v2010_v32 = vmax.f32 %v1958_v56, 0.0 }
 0x30b   :  { %v2042_v40 = vpack.c.bf16 %v2010_v32, %v2010_v32 }
 0x30d   :  { %v2158_v28 = vunpack.c.l.b16 %v2042_v40 }
 0x30e   :  { %v1959_v26 = vpop.f32.mrf.mxu3  ;;  %v2263_v60 = vpop.f32.mrf.mxu0 }
 0x30f   :  { %v1960_v45 = vadd.f32 %v4692_v55, %v1959_v26  ;;  %v2264_v21 = vadd.f32 %v4734_v9, %v2263_v60 }
 0x311   :  { %v2011_v15 = vmax.f32 %v1960_v45, 0.0  ;;  %2343 = vst.msk [vmem:[#allocation4 + $0x8] sm:$0xff] %vm2341_vm1, %v2264_v21 }
 0x313   :  { %v2043_v48 = vpack.c.bf16 %v2011_v15, %v2011_v15  ;;  %v3359_v17 = vpack.c.bf16 %v2011_v15, %v2010_v32 }
 0x315   :  { %3399 = vst [vmem:[#allocation2 + $0x48] sm:$0xff] %v3359_v17   ;;  %v2159_v39 = vunpack.c.l.b16 %v2043_v48 }
 0x316   :  { %v1962_v24 = vpop.f32.mrf.mxu3  ;;  %v2266_v29 = vpop.f32.mrf.mxu0 }
 0x317   :  { %v2267_v44 = vadd.f32 %v4734_v9, %v2266_v29  ;;  %v2181_v54 = vpack.c.b16 %v2159_v39, %v2158_v28  ;;  %v1963_v11 = vadd.f32 %v4692_v55, %v1962_v24 }
 0x319   :  { %2344 = vst.msk [vmem:[#allocation4 + $0x10] sm:$0xff] %vm2341_vm1, %v2267_v44  ;;  %2305 = vmatmul.bf16.gmra.mxu0 %v2181_v54  ;;  %v2012_v63 = vmax.f32 %v1963_v11, 0.0 }
 0x31b   :  { %v2044_v5 = vpack.c.bf16 %v2012_v63, %v2012_v63 }
 0x31d   :  { %v2160_v19 = vunpack.c.l.b16 %v2044_v5 }
 0x31e   :  { %v1964_v49 = vpop.f32.mrf.mxu3  ;;  %v2268_v7 = vpop.f32.mrf.mxu0 }
 0x31f   :  { %v1965_v14 = vadd.f32 %v4692_v55, %v1964_v49  ;;  %v2269_v47 = vadd.f32 %v4734_v9, %v2268_v7 }
 0x321   :  { %v2013_v22 = vmax.f32 %v1965_v14, 0.0  ;;  %2345 = vst.msk [vmem:[#allocation4 + $0x18] sm:$0xff] %vm2341_vm1, %v2269_v47 }
 0x323   :  { %v2045_v42 = vpack.c.bf16 %v2013_v22, %v2013_v22  ;;  %v3364_v6 = vpack.c.bf16 %v2013_v22, %v2012_v63 }
 0x325   :  { %3400 = vst [vmem:[#allocation2 + $0x50] sm:$0xff] %v3364_v6   ;;  %v2161_v51 = vunpack.c.l.b16 %v2045_v42 }
 0x326   :  { %v1967_v13 = vpop.f32.mrf.mxu3  ;;  %v2271_v33 = vpop.f32.mrf.mxu0 }
 0x327   :  { %v2272_v18 = vadd.f32 %v4734_v9, %v2271_v33  ;;  %v2182_v12 = vpack.c.b16 %v2161_v51, %v2160_v19  ;;  %v1968_v41 = vadd.f32 %v4692_v55, %v1967_v13 }
 0x329   :  { %2346 = vst.msk [vmem:[#allocation4 + $0x20] sm:$0xff] %vm2341_vm1, %v2272_v18  ;;  %2310 = vmatmul.bf16.gmra.mxu0 %v2182_v12  ;;  %v2014_v35 = vmax.f32 %v1968_v41, 0.0 }
 0x32b   :  { %v2046_v16 = vpack.c.bf16 %v2014_v35, %v2014_v35 }
 0x32d   :  { %v2162_v10 = vunpack.c.l.b16 %v2046_v16 }
 0x32e   :  { %v1969_v31 = vpop.f32.mrf.mxu3  ;;  %v2273_v53 = vpop.f32.mrf.mxu0 }
 0x32f   :  { %v1970_v38 = vadd.f32 %v4692_v55, %v1969_v31  ;;  %v2274_v3 = vadd.f32 %v4734_v9, %v2273_v53 }
 0x331   :  { %v2015_v43 = vmax.f32 %v1970_v38, 0.0  ;;  %2347 = vst.msk [vmem:[#allocation4 + $0x28] sm:$0xff] %vm2341_vm1, %v2274_v3 }
 0x333   :  { %v2047_v59 = vpack.c.bf16 %v2015_v43, %v2015_v43  ;;  %v3369_v46 = vpack.c.bf16 %v2015_v43, %v2014_v35 }
 0x335   :  { %3401 = vst [vmem:[#allocation2 + $0x58] sm:$0xff] %v3369_v46   ;;  %v2163_v20 = vunpack.c.l.b16 %v2047_v59 }
 0x336   :  { %v1972_v34 = vpop.f32.mrf.mxu3  ;;  %v2276_v1 = vpop.f32.mrf.mxu0 }
 0x337   :  { %v2277_v37 = vadd.f32 %v4734_v9, %v2276_v1  ;;  %v2183_v0 = vpack.c.b16 %v2163_v20, %v2162_v10  ;;  %v1973_v50 = vadd.f32 %v4692_v55, %v1972_v34 }
 0x339   :  { %2348 = vst.msk [vmem:[#allocation4 + $0x30] sm:$0xff] %vm2341_vm1, %v2277_v37  ;;  %2315 = vmatmul.bf16.gmra.mxu0 %v2183_v0  ;;  %v2016_v23 = vmax.f32 %v1973_v50, 0.0 }
 0x33b   :  { %v2048_v62 = vpack.c.bf16 %v2016_v23, %v2016_v23 }
 0x33d   :  { %v2164_v61 = vunpack.c.l.b16 %v2048_v62 }
 0x33e   :  { %v1974_v27 = vpop.f32.mrf.mxu3  ;;  %v2278_v2 = vpop.f32.mrf.mxu0 }
 0x33f   :  { %v1975_v36 = vadd.f32 %v4692_v55, %v1974_v27  ;;  %v2279_v57 = vadd.f32 %v4734_v9, %v2278_v2 }
 0x341   :  { %v2017_v8 = vmax.f32 %v1975_v36, 0.0  ;;  %2349 = vst.msk [vmem:[#allocation4 + $0x38] sm:$0xff] %vm2341_vm1, %v2279_v57 }
 0x343   :  { %v2049_v25 = vpack.c.bf16 %v2017_v8, %v2017_v8  ;;  %v3374_v58 = vpack.c.bf16 %v2017_v8, %v2016_v23 }
 0x345   :  { %3402 = vst [vmem:[#allocation2 + $0x60] sm:$0xff] %v3374_v58   ;;  %v2165_v52 = vunpack.c.l.b16 %v2049_v25 }
 0x346   :  { %v1977_v30 = vpop.f32.mrf.mxu3  ;;  %v2281_v4 = vpop.f32.mrf.mxu0 }
 0x347   :  { %v2282_v56 = vadd.f32 %v4734_v9, %v2281_v4  ;;  %v2184_v32 = vpack.c.b16 %v2165_v52, %v2164_v61  ;;  %v1978_v26 = vadd.f32 %v4692_v55, %v1977_v30 }
 0x349   :  { %2350 = vst.msk [vmem:[#allocation4 + $0x40] sm:$0xff] %vm2341_vm1, %v2282_v56  ;;  %2320 = vmatmul.bf16.gmra.mxu0 %v2184_v32  ;;  %v2018_v60 = vmax.f32 %v1978_v26, 0.0 }
 0x34b   :  { %v2050_v48 = vpack.c.bf16 %v2018_v60, %v2018_v60 }
 0x34d   :  { %v2166_v24 = vunpack.c.l.b16 %v2050_v48 }
 0x34e   :  { %v1979_v45 = vpop.f32.mrf.mxu3  ;;  %v2283_v21 = vpop.f32.mrf.mxu0 }
 0x34f   :  { %v1980_v40 = vadd.f32 %v4692_v55, %v1979_v45  ;;  %v2284_v15 = vadd.f32 %v4734_v9, %v2283_v21 }
 0x351   :  { %v2019_v17 = vmax.f32 %v1980_v40, 0.0  ;;  %2351 = vst.msk [vmem:[#allocation4 + $0x48] sm:$0xff] %vm2341_vm1, %v2284_v15 }
 0x353   :  { %v2051_v28 = vpack.c.bf16 %v2019_v17, %v2019_v17  ;;  %v3379_v39 = vpack.c.bf16 %v2019_v17, %v2018_v60 }
 0x355   :  { %3403 = vst [vmem:[#allocation2 + $0x68] sm:$0xff] %v3379_v39   ;;  %v2167_v29 = vunpack.c.l.b16 %v2051_v28 }
 0x356   :  { %v1982_v44 = vpop.f32.mrf.mxu3  ;;  %v2286_v54 = vpop.f32.mrf.mxu0 }
 0x357   :  { %v2287_v11 = vadd.f32 %v4734_v9, %v2286_v54  ;;  %v2185_v63 = vpack.c.b16 %v2167_v29, %v2166_v24  ;;  %v1983_v49 = vadd.f32 %v4692_v55, %v1982_v44 }
 0x359   :  { %2352 = vst.msk [vmem:[#allocation4 + $0x50] sm:$0xff] %vm2341_vm1, %v2287_v11  ;;  %2325 = vmatmul.bf16.gmra.mxu0 %v2185_v63  ;;  %v2020_v7 = vmax.f32 %v1983_v49, 0.0 }
 0x35b   :  { %v2052_v42 = vpack.c.bf16 %v2020_v7, %v2020_v7 }
 0x35d   :  { %v2168_v13 = vunpack.c.l.b16 %v2052_v42 }
 0x35e   :  { %v1984_v14 = vpop.f32.mrf.mxu3  ;;  %v2288_v47 = vpop.f32.mrf.mxu0 }
 0x35f   :  { %v1985_v5 = vadd.f32 %v4692_v55, %v1984_v14  ;;  %v2289_v22 = vadd.f32 %v4734_v9, %v2288_v47 }
 0x361   :  { %v2021_v6 = vmax.f32 %v1985_v5, 0.0  ;;  %2353 = vst.msk [vmem:[#allocation4 + $0x58] sm:$0xff] %vm2341_vm1, %v2289_v22 }
 0x363   :  { %v2053_v19 = vpack.c.bf16 %v2021_v6, %v2021_v6  ;;  %v3384_v51 = vpack.c.bf16 %v2021_v6, %v2020_v7 }
 0x365   :  { %3404 = vst [vmem:[#allocation2 + $0x70] sm:$0xff] %v3384_v51   ;;  %v2169_v33 = vunpack.c.l.b16 %v2053_v19 }
 0x366   :  { %v1987_v18 = vpop.f32.mrf.mxu3  ;;  %v2291_v12 = vpop.f32.mrf.mxu0 }
 0x367   :  { %v2292_v41 = vadd.f32 %v4734_v9, %v2291_v12  ;;  %v2186_v35 = vpack.c.b16 %v2169_v33, %v2168_v13  ;;  %v1988_v31 = vadd.f32 %v4692_v55, %v1987_v18 }
 0x369   :  { %2354 = vst.msk [vmem:[#allocation4 + $0x60] sm:$0xff] %vm2341_vm1, %v2292_v41  ;;  %2330 = vmatmul.bf16.gmra.mxu0 %v2186_v35  ;;  %v2022_v53 = vmax.f32 %v1988_v31, 0.0 }
 0x36b   :  { %v2054_v59 = vpack.c.bf16 %v2022_v53, %v2022_v53 }
 0x36d   :  { %v2170_v34 = vunpack.c.l.b16 %v2054_v59 }
 0x36e   :  { %v1989_v38 = vpop.f32.mrf.mxu3  ;;  %v2293_v3 = vpop.f32.mrf.mxu0 }
 0x36f   :  { %v1990_v16 = vadd.f32 %v4692_v55, %v1989_v38  ;;  %v2294_v43 = vadd.f32 %v4734_v9, %v2293_v3 }
 0x371   :  { %v2023_v46 = vmax.f32 %v1990_v16, 0.0  ;;  %2355 = vst.msk [vmem:[#allocation4 + $0x68] sm:$0xff] %vm2341_vm1, %v2294_v43 }
 0x373   :  { %v2055_v10 = vpack.c.bf16 %v2023_v46, %v2023_v46  ;;  %v3389_v20 = vpack.c.bf16 %v2023_v46, %v2022_v53 }
 0x375   :  { %3405 = vst [vmem:[#allocation2 + $0x78] sm:$0xff] %v3389_v20   ;;  %v2171_v1 = vunpack.c.l.b16 %v2055_v10 }
 0x376   :  { %v2296_v37 = vpop.f32.mrf.mxu0 }
 0x377   :  { %v2297_v0 = vadd.f32 %v4734_v9, %v2296_v37  ;;  %v2187_v50 = vpack.c.b16 %v2171_v1, %v2170_v34 }
 0x379   :  { %2356 = vst.msk [vmem:[#allocation4 + $0x70] sm:$0xff] %vm2341_vm1, %v2297_v0  ;;  %2335 = vmatmul.bf16.gmra.mxu0 %v2187_v50 }
 0x37e   :  { %v2298_v23 = vpop.f32.mrf.mxu0 }
 0x37f   :  { %v2299_v55 = vadd.f32 %v4734_v9, %v2298_v23 }
 0x381   :  { %2357 = vst.msk [vmem:[#allocation4 + $0x78] sm:$0xff] %vm2341_vm1, %v2299_v55 }
 0x386   :  { %v2301_v27 = vpop.f32.mrf.mxu0 }
 0x387   :  { %v2302_v2 = vadd.f32 %v4734_v9, %v2301_v27 }
 0x389   :  { %2358 = vst.msk [vmem:[#allocation4 + $0x80] sm:$0xff] %vm2341_vm1, %v2302_v2 }
 0x38e   :  { %v2303_v36 = vpop.f32.mrf.mxu0 }
 0x38f   :  { %v2304_v57 = vadd.f32 %v4734_v9, %v2303_v36 }
 0x391   :  { %2359 = vst.msk [vmem:[#allocation4 + $0x88] sm:$0xff] %vm2341_vm1, %v2304_v57 }
 0x396   :  { %v2306_v62 = vpop.f32.mrf.mxu0 }
 0x397   :  { %v2307_v8 = vadd.f32 %v4734_v9, %v2306_v62 }
 0x399   :  { %2360 = vst.msk [vmem:[#allocation4 + $0x90] sm:$0xff] %vm2341_vm1, %v2307_v8 }
 0x39e   :  { %v2308_v25 = vpop.f32.mrf.mxu0 }
 0x39f   :  { %v2309_v58 = vadd.f32 %v4734_v9, %v2308_v25 }
 0x3a1   :  { %2361 = vst.msk [vmem:[#allocation4 + $0x98] sm:$0xff] %vm2341_vm1, %v2309_v58 }
 0x3a6   :  { %v2311_v61 = vpop.f32.mrf.mxu0 }
 0x3a7   :  { %v2312_v52 = vadd.f32 %v4734_v9, %v2311_v61 }
 0x3a9   :  { %2362 = vst.msk [vmem:[#allocation4 + $0xa0] sm:$0xff] %vm2341_vm1, %v2312_v52 }
 0x3ae   :  { %v2313_v30 = vpop.f32.mrf.mxu0 }
 0x3af   :  { %v2314_v4 = vadd.f32 %v4734_v9, %v2313_v30 }
 0x3b1   :  { %2363 = vst.msk [vmem:[#allocation4 + $0xa8] sm:$0xff] %vm2341_vm1, %v2314_v4 }
 0x3b6   :  { %v2316_v56 = vpop.f32.mrf.mxu0 }
 0x3b7   :  { %v2317_v32 = vadd.f32 %v4734_v9, %v2316_v56 }
 0x3b9   :  { %2364 = vst.msk [vmem:[#allocation4 + $0xb0] sm:$0xff] %vm2341_vm1, %v2317_v32 }
 0x3be   :  { %v2318_v26 = vpop.f32.mrf.mxu0 }
 0x3bf   :  { %v2319_v60 = vadd.f32 %v4734_v9, %v2318_v26 }
 0x3c1   :  { %2365 = vst.msk [vmem:[#allocation4 + $0xb8] sm:$0xff] %vm2341_vm1, %v2319_v60 }
 0x3c6   :  { %v2321_v45 = vpop.f32.mrf.mxu0 }
 0x3c7   :  { %v2322_v21 = vadd.f32 %v4734_v9, %v2321_v45 }
 0x3c9   :  { %2366 = vst.msk [vmem:[#allocation4 + $0xc0] sm:$0xff] %vm2341_vm1, %v2322_v21 }
 0x3ce   :  { %v2323_v40 = vpop.f32.mrf.mxu0 }
 0x3cf   :  { %v2324_v15 = vadd.f32 %v4734_v9, %v2323_v40 }
 0x3d1   :  { %2367 = vst.msk [vmem:[#allocation4 + $0xc8] sm:$0xff] %vm2341_vm1, %v2324_v15 }
 0x3d6   :  { %v2326_v48 = vpop.f32.mrf.mxu0 }
 0x3d7   :  { %v2327_v17 = vadd.f32 %v4734_v9, %v2326_v48 }
 0x3d9   :  { %2368 = vst.msk [vmem:[#allocation4 + $0xd0] sm:$0xff] %vm2341_vm1, %v2327_v17 }
 0x3de   :  { %v2328_v28 = vpop.f32.mrf.mxu0 }
 0x3df   :  { %v2329_v39 = vadd.f32 %v4734_v9, %v2328_v28 }
 0x3e1   :  { %2369 = vst.msk [vmem:[#allocation4 + $0xd8] sm:$0xff] %vm2341_vm1, %v2329_v39 }
 0x3e6   :  { %v2331_v24 = vpop.f32.mrf.mxu0 }
 0x3e7   :  { %v2332_v29 = vadd.f32 %v4734_v9, %v2331_v24 }
 0x3e9   :  { %2370 = vst.msk [vmem:[#allocation4 + $0xe0] sm:$0xff] %vm2341_vm1, %v2332_v29 }
 0x3ee   :  { %v2333_v44 = vpop.f32.mrf.mxu0 }
 0x3ef   :  { %v2334_v54 = vadd.f32 %v4734_v9, %v2333_v44 }
 0x3f1   :  { %2371 = vst.msk [vmem:[#allocation4 + $0xe8] sm:$0xff] %vm2341_vm1, %v2334_v54 }
 0x3f6   :  { %v2336_v11 = vpop.f32.mrf.mxu0 }
 0x3f7   :  { %v2337_v63 = vadd.f32 %v4734_v9, %v2336_v11 }
 0x3f9   :  { %2372 = vst.msk [vmem:[#allocation4 + $0xf0] sm:$0xff] %vm2341_vm1, %v2337_v63 }
 0x3fe   :  { %v2338_v49 = vpop.f32.mrf.mxu0 }
 0x3ff   :  { %v2339_v7 = vadd.f32 %v4734_v9, %v2338_v49 }
 0x401   :  { %2373 = vst.msk [vmem:[#allocation4 + $0xf8] sm:$0xff] %vm2341_vm1, %v2339_v7 }
 0x402   :  { %2377 = vsyncadd [#allocation3], 1984  ;;  %s2380_s9 = sshll.u32 %s4827_s7, 4  ;;  %s3491_s10 = smov [#allocation2]   ;;  %s2381_s9 = int_to_ptr.hbm [resolvable:$true] %s2380_s9 }
 0x403   :  { %s2378_s11 = sshll.u32 %s3491_s10, 4  ;;  %s3492_s12 = smov 64   ;;  %s2379_s11 = int_to_ptr.vmem [resolvable:$true] %s2378_s11 }
 0x404   :  { %s3493_s13 = smov 4  }
 0x405   :  { %2386 = dma.vmem_to_hbm [thread:$0]  %s2379_s11, 64, %s2381_s9, [#allocation3], %s3492_s12, %s3492_s12, %s3493_s13  }
 0x406   :  { %2390 = vsyncadd [#allocation5], 3968  ;;  %s2393_s16 = sshll.u32 %s4828_s8, 4  ;;  %s3494_s17 = smov [#allocation4]   ;;  %s2394_s16 = int_to_ptr.hbm [resolvable:$true] %s2393_s16 }
 0x407   :  { %s2391_s18 = sshll.u32 %s3494_s17, 4  ;;  %s3495_s2 = smov 128   ;;  %s2392_s18 = int_to_ptr.vmem [resolvable:$true] %s2391_s18 }
 0x408   :  { %s3496_s19 = smov 8  }
 0x409   :  { %2399 = dma.vmem_to_hbm [thread:$0]  %s2392_s18, 128, %s2394_s16, [#allocation5], %s3495_s2, %s3495_s2, %s3496_s19  }
 0x40a   :  { %3487 = dma.done.wait [#allocation3], 2048  }
 0x40b   :  { %3488 = vsyncadd [#allocation3], 4294965248 }
 0x40c   :  { %3489 = dma.done.wait [#allocation5], 4096  }
 0x40d   :  { %3490 = vsyncadd [#allocation5], 4294963200 }
 0x40e   :  { %2408 = vsyncpa [#allocation3], 1 }
 0x40f   :  { %2409 = vsyncpa [#allocation5], 1 }

</bundles_post_ra>
